<compile_context>
chip_gen: v6e
topology: v6e:2x2x1
jax: 0.10.0
libtpu: 0.0.40
codegen_flags: <defaults>
</compile_context>

<pallas_src>
import functools

import jax
import jax.numpy as jnp
from jax.experimental import pallas as pl
from jax.experimental.pallas import tpu as pltpu


def _round_up(a, m):
    return (a + m - 1) // m * m


# ----------------------------- fused MLP kernel -----------------------------


def _mlp_fused_kernel(x_ref, w1_ref, b1_ref, w2_ref, b2_ref, o_ref):
    # x_ref:  (tm, C)  f32      w1_ref: (C, Hf) bf16   b1_ref: (1, Hf) f32
    # w2_ref: (Hf, O)  bf16     b2_ref: (1, O)  f32    o_ref:  (tm, O)
    x = x_ref[...].astype(jnp.bfloat16)                     # cast in VPU
    h = jnp.dot(x, w1_ref[...], preferred_element_type=jnp.float32)
    h = h + b1_ref[...]
    # TODO(synk): PyTorch nn.GELU default is the exact erf form; the tanh
    # approximation is used here (EUP-friendly lowering on TPU).
    c = 0.7978845608028654  # sqrt(2/pi)
    h = 0.5 * h * (1.0 + jnp.tanh(c * (h + 0.044715 * h * h * h)))
    y = jnp.dot(h.astype(jnp.bfloat16), w2_ref[...],
                preferred_element_type=jnp.float32)
    y = y + b2_ref[...]
    o_ref[...] = y.astype(o_ref.dtype)


def _pick_tm(m):
    """M-tile: large (amortize per-step overhead), >= 2 steps when possible
    (so v7x's 2 TensorCores both get work), multiple of 8 (sublane)."""
    if m >= 2048:
        return 1024
    if m >= 1024:
        return 512
    if m >= 16:
        return _round_up((m + 1) // 2, 8)
    return _round_up(max(m, 1), 8)


def mlp_fused(x2d, w1_bf16, b1, w2_bf16, b2, *, out_dtype=jnp.float32):
    """y = (gelu(x @ w1 + b1)) @ w2 + b2.  x2d: [M, C] f32 -> [M, O]."""
    M, C = x2d.shape
    C2, Hf = w1_bf16.shape
    Hf2, O = w2_bf16.shape
    assert C == C2 and Hf == Hf2
    assert b1.shape == (1, Hf) and b2.shape == (1, O)

    # Weights stay fully VMEM-resident; fine for this module's tiny features.
    # TODO(synk): fall back to a K-tiled two-pass kernel for very large dims.
    assert (C * Hf + Hf * O) * 2 < (8 << 20), "weights too large for fused path"

    tm = _pick_tm(M)
    Mp = _round_up(M, tm)
    xp = x2d if Mp == M else jnp.pad(x2d, ((0, Mp - M), (0, 0)))
    grid = (Mp // tm,)

    cost = pl.CostEstimate(
        flops=2 * Mp * C * Hf + 2 * Mp * Hf * O,
        transcendentals=Mp * Hf,
        bytes_accessed=(Mp * C * 4 + C * Hf * 2 + Hf * 4 + Hf * O * 2 + O * 4
                        + Mp * O * jnp.dtype(out_dtype).itemsize),
    )

    out = pl.pallas_call(
        _mlp_fused_kernel,
        out_shape=jax.ShapeDtypeStruct((Mp, O), out_dtype),
        grid_spec=pltpu.PrefetchScalarGridSpec(
            num_scalar_prefetch=0,
            grid=grid,
            in_specs=[
                pl.BlockSpec((tm, C), lambda i: (i, 0)),    # streamed x tile
                pl.BlockSpec((C, Hf), lambda i: (0, 0)),    # resident w1
                pl.BlockSpec((1, Hf), lambda i: (0, 0)),    # resident b1
                pl.BlockSpec((Hf, O), lambda i: (0, 0)),    # resident w2
                pl.BlockSpec((1, O), lambda i: (0, 0)),     # resident b2
            ],
            out_specs=pl.BlockSpec((tm, O), lambda i: (i, 0)),
        ),
        compiler_params=pltpu.CompilerParams(
            dimension_semantics=("parallel",),
        ),
        cost_estimate=cost,
    )(xp, w1_bf16, b1, w2_bf16, b2)

    return out if Mp == M else out[:M]


# ------------------------------ Module port --------------------------------


class MlpPallas:
    """JAX/Pallas port of Mlp: fc1 -> GELU -> (dropout) -> fc2 -> (dropout)."""

    def __init__(self, in_features, hidden_features=None, out_features=None,
                 drop=0.0, key=None):
        out_features = out_features or in_features
        hidden_features = hidden_features or in_features
        self.in_features = in_features
        self.hidden_features = hidden_features
        self.out_features = out_features
        # TODO(synk): dropout with drop != 0.0 is a no-op here (inference
        # semantics); training-mode dropout would use pltpu.prng_* in-kernel.
        self.drop = drop

        if key is None:
            key = jax.random.PRNGKey(0)
        k1, k2 = jax.random.split(key)
        # trunc_normal_(std=0.02) weights, zero biases, stored [in, out].
        w1 = jax.random.truncated_normal(
            k1, -2.0, 2.0, (in_features, hidden_features), jnp.float32) * 0.02
        w2 = jax.random.truncated_normal(
            k2, -2.0, 2.0, (hidden_features, out_features), jnp.float32) * 0.02
        self.w1 = w1
        self.w2 = w2
        # Weights are tiny and reused every step: pre-cast to bf16 once.
        self.w1_bf16 = w1.astype(jnp.bfloat16)
        self.w2_bf16 = w2.astype(jnp.bfloat16)
        self.b1 = jnp.zeros((1, hidden_features), jnp.float32)
        self.b2 = jnp.zeros((1, out_features), jnp.float32)

    def __call__(self, x):
        # x: [B, C, H, W, D] channel-first (matches the PyTorch module).
        B, C, H, W, D = x.shape
        assert C == self.in_features
        xm = jnp.transpose(x, (0, 2, 3, 4, 1)).reshape(B * H * W * D, C)
        out = mlp_fused(xm, self.w1_bf16, self.b1, self.w2_bf16, self.b2,
                        out_dtype=jnp.float32)
        out = out.reshape(B, H, W, D, self.out_features)
        return jnp.transpose(out, (0, 4, 1, 2, 3))


# --------------------------------- main -------------------------------------

if __name__ == "__main__":
    key = jax.random.PRNGKey(0)
    k_x, k_p = jax.random.split(key)

    # Small shapes consistent with the module's forward: [B, C, H, W, D].
    B, C, H, W, D = 2, 32, 8, 8, 8
    hidden = 64

    x = jax.random.normal(k_x, (B, C, H, W, D), dtype=jnp.float32)
    model = MlpPallas(in_features=C, hidden_features=hidden, key=k_p)

    fwd = jax.jit(model.__call__)
    out = jax.block_until_ready(fwd(x))
    assert out.shape == (B, C, H, W, D)

    # Pure-JAX reference mirroring the kernel's bf16 operand quantization.
    def _gelu_tanh(v):
        c = 0.7978845608028654
        return 0.5 * v * (1.0 + jnp.tanh(c * (v + 0.044715 * v * v * v)))

    def ref_forward(x):
        xm = jnp.transpose(x, (0, 2, 3, 4, 1)).reshape(-1, C)
        xb = xm.astype(jnp.bfloat16).astype(jnp.float32)
        w1b = model.w1.astype(jnp.bfloat16).astype(jnp.float32)
        h = _gelu_tanh(xb @ w1b + model.b1)
        hb = h.astype(jnp.bfloat16).astype(jnp.float32)
        w2b = model.w2.astype(jnp.bfloat16).astype(jnp.float32)
        o = hb @ w2b + model.b2
        o = o.reshape(B, H, W, D, -1)
        return jnp.transpose(o, (0, 4, 1, 2, 3))

    ref = jax.block_until_ready(ref_forward(x))
    err = float(jnp.max(jnp.abs(out - ref)))
    assert jnp.allclose(out, ref, atol=1e-2, rtol=1e-2), err

    print("KERNEL_OK")
</pallas_src>

<mosaic_0001>
module attributes {stable_mosaic.version = 11 : i64} {
  func.func @_mlp_fused_kernel(%arg0: i32, %arg1: memref<512x32xf32, #tpu.memory_space<vmem>>, %arg2: memref<32x64xbf16, #tpu.memory_space<vmem>>, %arg3: memref<1x64xf32, #tpu.memory_space<vmem>>, %arg4: memref<64x32xbf16, #tpu.memory_space<vmem>>, %arg5: memref<1x32xf32, #tpu.memory_space<vmem>>, %arg6: memref<512x32xf32, #tpu.memory_space<vmem>>) attributes {dimension_semantics = [#tpu.dimension_semantics<parallel>], iteration_bounds = array<i64: 2>, scalar_prefetch = 0 : i64, scratch_operands = 0 : i64, tpu.core_type = #tpu.core_type<tc>, window_params = [{transform_indices = @transform_0, window_bounds = array<i64: 512, 32>}, {pipeline_mode = #tpu.pipeline_mode<synchronous>, transform_indices = @transform_1, window_bounds = array<i64: 32, 64>}, {pipeline_mode = #tpu.pipeline_mode<synchronous>, transform_indices = @transform_2, window_bounds = array<i64: 1, 64>}, {pipeline_mode = #tpu.pipeline_mode<synchronous>, transform_indices = @transform_3, window_bounds = array<i64: 64, 32>}, {pipeline_mode = #tpu.pipeline_mode<synchronous>, transform_indices = @transform_4, window_bounds = array<i64: 1, 32>}, {transform_indices = @transform_5, window_bounds = array<i64: 512, 32>}]} {
    %c0 = arith.constant 0 : index
    %c0_0 = arith.constant 0 : index
    %0 = vector.load %arg1[%c0, %c0_0] : memref<512x32xf32, #tpu.memory_space<vmem>>, vector<512x32xf32>
    %1 = arith.truncf %0 : vector<512x32xf32> to vector<512x32xbf16>
    %c0_1 = arith.constant 0 : index
    %c0_2 = arith.constant 0 : index
    %2 = vector.load %arg2[%c0_1, %c0_2] : memref<32x64xbf16, #tpu.memory_space<vmem>>, vector<32x64xbf16>
    %cst = arith.constant dense<0.000000e+00> : vector<512x64xf32>
    %3 = tpu.matmul %1, %2, %cst {dimension_numbers = #tpu.dot_dimension_numbers<[1], [0], [0], [1], [0, 0, 1, 1], [], []>} : vector<512x32xbf16>, vector<32x64xbf16>, vector<512x64xf32> -> vector<512x64xf32>
    %c0_3 = arith.constant 0 : index
    %c0_4 = arith.constant 0 : index
    %4 = vector.load %arg3[%c0_3, %c0_4] : memref<1x64xf32, #tpu.memory_space<vmem>>, vector<1x64xf32>
    %5 = vector.broadcast %4 : vector<1x64xf32> to vector<512x64xf32>
    %6 = arith.addf %3, %5 : vector<512x64xf32>
    %cst_5 = arith.constant 5.000000e-01 : f32
    %7 = vector.broadcast %cst_5 : f32 to vector<512x64xf32>
    %8 = arith.mulf %7, %6 : vector<512x64xf32>
    %cst_6 = arith.constant 4.471500e-02 : f32
    %9 = vector.broadcast %cst_6 : f32 to vector<512x64xf32>
    %10 = arith.mulf %9, %6 : vector<512x64xf32>
    %11 = arith.mulf %10, %6 : vector<512x64xf32>
    %12 = arith.mulf %11, %6 : vector<512x64xf32>
    %13 = arith.addf %6, %12 : vector<512x64xf32>
    %cst_7 = arith.constant 0.797884583 : f32
    %14 = vector.broadcast %cst_7 : f32 to vector<512x64xf32>
    %15 = arith.mulf %14, %13 : vector<512x64xf32>
    %16 = math.tanh %15 : vector<512x64xf32>
    %cst_8 = arith.constant 1.000000e+00 : f32
    %17 = vector.broadcast %cst_8 : f32 to vector<512x64xf32>
    %18 = arith.addf %17, %16 : vector<512x64xf32>
    %19 = arith.mulf %8, %18 : vector<512x64xf32>
    %20 = arith.truncf %19 : vector<512x64xf32> to vector<512x64xbf16>
    %c0_9 = arith.constant 0 : index
    %c0_10 = arith.constant 0 : index
    %21 = vector.load %arg4[%c0_9, %c0_10] : memref<64x32xbf16, #tpu.memory_space<vmem>>, vector<64x32xbf16>
    %cst_11 = arith.constant dense<0.000000e+00> : vector<512x32xf32>
    %22 = tpu.matmul %20, %21, %cst_11 {dimension_numbers = #tpu.dot_dimension_numbers<[1], [0], [0], [1], [0, 0, 1, 1], [], []>} : vector<512x64xbf16>, vector<64x32xbf16>, vector<512x32xf32> -> vector<512x32xf32>
    %c0_12 = arith.constant 0 : index
    %c0_13 = arith.constant 0 : index
    %23 = vector.load %arg5[%c0_12, %c0_13] : memref<1x32xf32, #tpu.memory_space<vmem>>, vector<1x32xf32>
    %24 = vector.broadcast %23 : vector<1x32xf32> to vector<512x32xf32>
    %25 = arith.addf %22, %24 : vector<512x32xf32>
    %c0_14 = arith.constant 0 : index
    %c0_15 = arith.constant 0 : index
    %26 = vector.load %arg6[%c0_14, %c0_15] : memref<512x32xf32, #tpu.memory_space<vmem>>, vector<512x32xf32>
    tpu.vector_store %arg6[%c0_14, %c0_15], %25 {strides = array<i32>} : memref<512x32xf32, #tpu.memory_space<vmem>>, vector<512x32xf32>,
    return
  }
  func.func @transform_0(%arg0: i32) -> (i32, i32) {
    %c0_i32 = arith.constant 0 : i32
    %c0_i32_0 = arith.constant 0 : i32
    return %arg0, %c0_i32 : i32, i32
  }
  func.func @transform_1(%arg0: i32) -> (i32, i32) {
    %c0_i32 = arith.constant 0 : i32
    %c0_i32_0 = arith.constant 0 : i32
    %c0_i32_1 = arith.constant 0 : i32
    return %c0_i32, %c0_i32_0 : i32, i32
  }
  func.func @transform_2(%arg0: i32) -> (i32, i32) {
    %c0_i32 = arith.constant 0 : i32
    %c0_i32_0 = arith.constant 0 : i32
    %c0_i32_1 = arith.constant 0 : i32
    return %c0_i32, %c0_i32_0 : i32, i32
  }
  func.func @transform_3(%arg0: i32) -> (i32, i32) {
    %c0_i32 = arith.constant 0 : i32
    %c0_i32_0 = arith.constant 0 : i32
    %c0_i32_1 = arith.constant 0 : i32
    return %c0_i32, %c0_i32_0 : i32, i32
  }
  func.func @transform_4(%arg0: i32) -> (i32, i32) {
    %c0_i32 = arith.constant 0 : i32
    %c0_i32_0 = arith.constant 0 : i32
    %c0_i32_1 = arith.constant 0 : i32
    return %c0_i32, %c0_i32_0 : i32, i32
  }
  func.func @transform_5(%arg0: i32) -> (i32, i32) {
    %c0_i32 = arith.constant 0 : i32
    %c0_i32_0 = arith.constant 0 : i32
    return %arg0, %c0_i32 : i32, i32
  }
}

</mosaic_0001>

<bundles_post_ra>
// kernel: a_call__.1
= control target key start
LH: loop header
LB: loop body
LE: loop exit
PB: predicated region body
PF: predicated region fallthrough
CT: control target
= control target key end

     0   :  { %10 = vsyncpa [#allocation3], 0  ;;  %s3865_s0 = inlined_call_operand.hbm [shape: f32[1024,32], index: 0, kind: input, shape index: {}]   ;;  %s3866_s1 = inlined_call_operand.hbm [shape: bf16[32,64], index: 1, kind: input, shape index: {}]   ;;  %s3867_s2 = inlined_call_operand.vmem [shape: f32[1,64], index: 2, kind: input, shape index: {}]   ;;  %s3868_s3 = inlined_call_operand.hbm [shape: bf16[64,32], index: 3, kind: input, shape index: {}]   ;;  %s3869_s4 = inlined_call_operand.vmem [shape: f32[1,32], index: 4, kind: input, shape index: {}]   ;;  %s3870_s5 = inlined_call_operand.hbm [shape: f32[1024,32], index: 5, kind: output, shape index: {}]  }
   0x1   :  { %12 = vsyncpa [#allocation3 + $0x1], 0 }
   0x2   :  { %13 = vsyncpa [#allocation6], 0 }
   0x3   :  { %14 = vsyncpa [#allocation4], 0 }
   0x4   :  { %16 = vsyncpa [#allocation4 + $0x1], 0  ;;  %s2683_s18 = smov 0   ;;  %s2685_s19 = smov 0  }
   0x5   :  { %s2687_s20 = smov 0   ;;  %s2689_s21 = smov 0  }
   0x6 LB: > { %s2704_s22 = sadd.s32 4294967295, %s2641_s21   ;;  %s1983_s23 = sadd.s32 4294967294, %s2641_s21   ;;  %s2641_s21 = sphi %s2689_s21, %s3892_s21   ;;  %s2637_s20 = sphi %s2687_s20, %s3891_s20   ;;  %s2633_s19 = sphi %s2685_s19, %s3890_s19   ;;  %s2629_s18 = sphi %s2683_s18, %s3889_s18  }
   0x7   : > { %p42_p0 = scmp.ne.s32.totalorder %s2633_s19, %s2629_s18  ;;  %p3871_p1 = scmp.eq.s32.totalorder %s2704_s22, 0 }
   0x8   : > { %p156_p3 = scmp.eq.s32.totalorder %s1983_s23, 1  ;;  %p1984_p5 = scmp.ge.s32.totalorder %s2641_s21, 1 }
   0x9   : > { %p2713_p4 = por %p3871_p1, %p42_p0  ;;  %p163_p7 = scmp.lt.s32.totalorder %s2641_s21, 3 }
   0xa   : > { %p2718_p6 = por %p156_p3, %p42_p0  ;;  %s2643_s27 = smov [#allocation5]  }
   0xb   : > { %s3875_s24 = scalar_select %p2713_p4, 1, 0 }
   0xc   : > { %s3876_s25 = scalar_select %p2718_p6, 1, 0 }
   0xd   : > { %p2723_p8 = pnand %p1984_p5, %p163_p7  ;;  %s175_s28 = sshll.u32 %s2643_s27, 4  ;;  %s176_s28 = int_to_ptr.vmem [resolvable:$true] %s175_s28 }
   0xe   : > { %s2644_s30 = smov [#allocation7]   ;;  %s2504_s7 = scalar_lea.vmem %s176_s28, 256 }
   0xf   : > { %s3877_s26 = scalar_select %p2723_p8, 1, 0 }
  0x10   : > { %p2297_p9 = pneg %p2723_p8  ;;  %s191_s6 = sshll.u32 %s2644_s30, 4  ;;  %s192_s6 = int_to_ptr.vmem [resolvable:$true] %s191_s6 }
  0x11   : > { %p2505_p13 = scmp.ne.s32.totalorder %s176_s28, %s2504_s7  ;;  %p2512_p5 = scmp.lt.s32.totalorder %s176_s28, %s176_s28 }
  0x12   : > { %p2732_p11 = pnand %p2297_p9, %p3871_p1  ;;  %p2513_p7 = scmp.lt.s32.totalorder %s2504_s7, %s2504_s7 }
  0x14   : > { %p2495_p12 = pneg %p2732_p11  ;;  %p2514_p10 = por %p2513_p7, %p2512_p5 }
  0x16   : > { %p2507_p0 = pnand %p2505_p13, %p2495_p12 }
  0x18   : > { %p2508_p3 = pneg %p2507_p0 }
  0x1a   : > { %p2515_p9 = pnand %p2514_p10, %p2508_p3 }
  0x1c   : > { %2518 = shalt.err (!%p2515_p9)
}
  0x1d   : > { %s2645_s8 = smov 64   ;;  %s2646_s9 = smov 4  }
  0x1e   : > { %2300 = dma.hbm_to_vmem [thread:$0]  (!%p2732_p11), %s3866_s1, 256, %s176_s28, [#allocation6], %s2645_s8, %s2645_s8, %s2646_s9  }
  0x1f   : > { %s2530_s12 = scalar_lea.vmem %s192_s6, 512  ;;  %p2538_p2 = scmp.lt.s32.totalorder %s192_s6, %s192_s6 }
  0x20   : > { %p2531_p1 = scmp.ne.s32.totalorder %s192_s6, %s2530_s12  ;;  %p2539_p6 = scmp.lt.s32.totalorder %s2530_s12, %s2530_s12 }
  0x22   : > { %p2533_p13 = pnand %p2531_p1, %p2495_p12  ;;  %p2540_p5 = por %p2539_p6, %p2538_p2 }
  0x24   : > { %p2534_p0 = pneg %p2533_p13 }
  0x26   : > { %p2541_p10 = pnand %p2540_p5, %p2534_p0 }
  0x28   : > { %2544 = shalt.err (!%p2541_p10)
}
  0x29   : > { %2303 = dma.hbm_to_vmem [thread:$0]  (!%p2732_p11), %s3868_s3, 512, %s192_s6, [#allocation6], %s2645_s8, %s2645_s8, %s2646_s9  }
  0x2a   : > { %s2755_s15 = sadd.s32 1, %s2641_s21   ;;  %s29_s16 = sadd.s32 1, %s2637_s20 }
  0x2b   : > { %s26_s17 = ssub.s32 %s2641_s21, %s2755_s15  ;;  %p36_p1 = scmp.ne.s32.totalorder %s2637_s20, %s2633_s19 }
  0x2c   : > { %p27_p2 = scmp.eq.s32.totalorder %s26_s17, 0  ;;  %p37_p6 = scmp.eq.s32.totalorder %s2641_s21, 0 }
  0x2d   : > { %p3879_p12 = scmp.eq.s32.totalorder %s2704_s22, 1  ;;  %p2314_p7 = scmp.lt.s32.totalorder %s2641_s21, 2 }
  0x2e   : > { %s2771_s27 = scalar_select %p27_p2, %s2637_s20, %s29_s16  }
  0x2f   : > { %p2765_p3 = por %p3879_p12, %p36_p1  ;;  %p38_p9 = por %p37_p6, %p36_p1 }
  0x30   : > { %s208_s28 = sand.u32 1, %s2637_s20   ;;  %s2073_s30 = sshll.u32 %s2641_s21, 13 }
  0x31   : > { %s3880_s23 = scalar_select %p2765_p3, 1, 0 }
  0x32   : > { %s1988_s29 = sshll.u32 %s208_s28, 9  ;;  %s2778_s8 = scalar_lea.hbm %s3865_s0, %s2073_s30 }
  0x33   : > { %s212_s9 = scalar_lea.vmem [#allocation2], %s1988_s29  ;;  %p2782_p11 = pnand %p2314_p7, %p38_p9 }
  0x34   : > { %s219_s10 = sshll.u32 %s212_s9, 4  ;;  %s2786_s12 = scalar_lea.sflag [#allocation3], %s208_s28  ;;  %s2780_s10 = int_to_ptr.vmem [resolvable:$true] %s219_s10 }
  0x35   : > { %s2545_s13 = scalar_lea.hbm %s2778_s8, 8192  ;;  %p2547_p0 = pneg %p2782_p11 }
  0x36   : > { %p2546_p13 = scmp.ne.s32.totalorder %s2778_s8, %s2545_s13  ;;  %s2550_s17 = scalar_lea.hbm %s3865_s0, 16384 }
  0x37   : > { %p2551_p1 = scmp.lt.s32.totalorder %s2778_s8, %s3865_s0  ;;  %p2552_p2 = scmp.lt.s32.totalorder %s2550_s17, %s2545_s13 }
  0x38   : > { %p2548_p5 = pnand %p2547_p0, %p2546_p13 }
  0x39   : > { %p2553_p6 = por %p2552_p2, %p2551_p1 }
  0x3a   : > { %p2549_p10 = pneg %p2548_p5 }
  0x3c   : > { %p2554_p12 = pnand %p2553_p6, %p2549_p10 }
  0x3e   : > { %2557 = shalt.err (!%p2554_p12)
}
  0x3f   : > { %s2558_s28 = scalar_lea.vmem %s2780_s10, 8192  ;;  %s2647_s6 = smov [#allocation2]  }
  0x40   : > { %p2559_p7 = scmp.ne.s32.totalorder %s2780_s10, %s2558_s28  ;;  %s2563_s7 = sshll.u32 %s2647_s6, 4  ;;  %s2564_s7 = int_to_ptr.vmem [resolvable:$false] %s2563_s7 }
  0x41   : > { %s2565_s9 = scalar_lea.vmem %s2564_s7, 16384  ;;  %p2566_p5 = scmp.lt.s32.totalorder %s2780_s10, %s2564_s7 }
  0x42   : > { %p2561_p9 = pnand %p2559_p7, %p2547_p0  ;;  %p2567_p3 = scmp.lt.s32.totalorder %s2565_s9, %s2558_s28 }
  0x44   : > { %p2562_p13 = pneg %p2561_p9  ;;  %p2568_p4 = por %p2567_p3, %p2566_p5 }
  0x46   : > { %p2569_p8 = pnand %p2568_p4, %p2562_p13 }
  0x48   : > { %2572 = shalt.err (!%p2569_p8)
}
  0x49   : > { %s2648_s13 = smov 128   ;;  %s2649_s14 = smov 8  }
  0x4a   : > { %2307 = dma.hbm_to_vmem [thread:$0]  (!%p2782_p11), %s2778_s8, 8192, %s2780_s10, %s2786_s12, %s2648_s13, %s2648_s13, %s2649_s14  }
  0x4b   : > { %p3882_p0 = scmp.ne.s32.totalorder %s3877_s26, 0 }
  0x4c   : > { %s2810_s16 = sand.u32 (!%p3882_p0), 1, %s2633_s19   ;;  %p3883_p4 = scmp.ne.s32.totalorder (!%p3882_p0), %s3875_s24, 0 }
  0x4d   : > { %231 = sbr.rel (%p3882_p0) target bundleno = 696 (0x2b8), region = 40  ;;  %s1992_s17 = sshll.u32 (!%p3882_p0), %s2810_s16, 9 }
  0x4e   : > { %s234_s29 = scalar_lea.sflag (!%p3882_p0), [#allocation3], %s2810_s16  ;;  %s2816_s30 = scalar_lea.vmem (!%p3882_p0), [#allocation2], %s1992_s17 }
  0x52   : > { %2616 = dma.done.wait (%p3883_p4), %s234_s29, 8192  }
  0x53   : > { %2618 = vsyncadd (%p3883_p4), %s234_s29, 4294959104  ;;  %p3884_p8 = scmp.eq.s32.totalorder %s2704_s22, 0 }
  0x55   : > { %2620 = dma.done.wait (%p3884_p8), [#allocation6], 768   ;;  %p3885_p3 = pmov %p3884_p8 }
  0x56   : > { %v2358_v0 = vld [vmem:[#allocation5 + $0x8] sm:$0xff]   ;;  %v2359_v1 = vld [vmem:[#allocation5] sm:$0xff]   ;;  %vm394_vm0 = vcmask 261120   ;;  %v277_v5 = vld [vmem:[%s2816_s30 + $0x10] sm:$0xff]  ;;  %vm1427_vm1 = vcmask 523264   ;;  %s3622_s28 = scalar_lea.vmem [#allocation8], %s1992_s17 }
  0x57   : > { %2622 = vsyncadd (%p3885_p3), [#allocation6], 4294966528  ;;  %2145 = vmatprep.subr.bf16.mxu0 %v2358_v0  ;;  %v275_v2 = vld [vmem:[%s2816_s30] sm:$0xff]  ;;  %v276_v3 = vld [vmem:[%s2816_s30 + $0x8] sm:$0xff]  ;;  %s2074_s6 = sshll.u32 %s2704_s22, 13  ;;  %s1891_s7 = sshll.u32 %s3622_s28, 4  ;;  %s3817_s7 = int_to_ptr.vmem [resolvable:$true] %s1891_s7 }
  0x58   : > { %2146 = vmatpush3.bf16.msra.mxu0 %v2358_v0  ;;  %v339_v4 = vpack.c.bf16 %v276_v3, %v275_v2  ;;  %v278_v6 = vld [vmem:[%s2816_s30 + $0x18] sm:$0xff]  ;;  %v279_v7 = vld [vmem:[%s2816_s30 + $0x20] sm:$0xff]  ;;  %v280_v8 = vld [vmem:[%s2816_s30 + $0x28] sm:$0xff]  ;;  %s3815_s14 = scalar_lea.hbm %s3870_s5, %s2074_s6  ;;  %s1878_s22 = scalar_lea.sflag [#allocation4], %s2810_s16 }
  0x59   : > { %2147 = vmatprep.subr.bf16.mxu0 %v2359_v1  ;;  %v340_v9 = vpack.c.bf16 %v278_v6, %v277_v5  ;;  %v341_v10 = vpack.c.bf16 %v280_v8, %v279_v7  ;;  %v281_v11 = vld [vmem:[%s2816_s30 + $0x30] sm:$0xff]  ;;  %v282_v12 = vld [vmem:[%s2816_s30 + $0x38] sm:$0xff]  ;;  %v283_v13 = vld [vmem:[%s2816_s30 + $0x40] sm:$0xff]  ;;  %s2573_s17 = scalar_lea.vmem %s3817_s7, 8192  ;;  %p3886_p10 = scmp.ne.s32.totalorder %s3880_s23, 0 }
  0x5a   : > { %2149 = vmatprep.mubr.msk.bf16.mxu0 %vm394_vm0, %v339_v4  ;;  %v284_v14 = vld [vmem:[%s2816_s30 + $0x48] sm:$0xff]  ;;  %v342_v15 = vpack.c.bf16 %v282_v12, %v281_v11  ;;  %v285_v17 = vld [vmem:[%s2816_s30 + $0x50] sm:$0xff]  ;;  %v286_v18 = vld [vmem:[%s2816_s30 + $0x58] sm:$0xff]  ;;  %p2574_p11 = scmp.ne.s32.totalorder %s3817_s7, %s2573_s17  ;;  %s2650_s29 = smov [#allocation8]  }
  0x5b   : > { %v343_v16 = vpack.c.bf16 %v284_v14, %v283_v13  ;;  %v287_v19 = vld [vmem:[%s2816_s30 + $0x60] sm:$0xff]  ;;  %v288_v20 = vld [vmem:[%s2816_s30 + $0x68] sm:$0xff]  ;;  %v344_v21 = vpack.c.bf16 %v286_v18, %v285_v17  ;;  %v289_v23 = vld [vmem:[%s2816_s30 + $0x70] sm:$0xff] }
  0x5c   : > { %2148 = vmatpush3.bf16.msra.mxu0 %v2359_v1  ;;  %v345_v22 = vpack.c.bf16 %v288_v20, %v287_v19  ;;  %v290_v24 = vld [vmem:[%s2816_s30 + $0x78] sm:$0xff]  ;;  %v291_v25 = vld [vmem:[%s2816_s30 + $0x80] sm:$0xff]  ;;  %v292_v26 = vld [vmem:[%s2816_s30 + $0x88] sm:$0xff]  ;;  %p2575_p1 = pnand %p2574_p11, %p3886_p10 }
  0x5d   : > { %v346_v27 = vpack.c.bf16 %v290_v24, %v289_v23  ;;  %v347_v28 = vpack.c.bf16 %v292_v26, %v291_v25  ;;  %v293_v29 = vld [vmem:[%s2816_s30 + $0x90] sm:$0xff]  ;;  %v294_v30 = vld [vmem:[%s2816_s30 + $0x98] sm:$0xff]  ;;  %v295_v31 = vld [vmem:[%s2816_s30 + $0xa0] sm:$0xff] }
  0x5e   : > { %v296_v32 = vld [vmem:[%s2816_s30 + $0xa8] sm:$0xff]  ;;  %v348_v33 = vpack.c.bf16 %v294_v30, %v293_v29  ;;  %v297_v35 = vld [vmem:[%s2816_s30 + $0xb0] sm:$0xff]  ;;  %v298_v36 = vld [vmem:[%s2816_s30 + $0xb8] sm:$0xff]  ;;  %p2576_p2 = pneg %p2575_p1 }
  0x5f   : > { %2150 = vmatmul.mubr.msk.bf16.vlgmr.msra.gmra.mxu0 %vm394_vm0, %v340_v9  ;;  %v349_v34 = vpack.c.bf16 %v296_v32, %v295_v31  ;;  %v299_v37 = vld [vmem:[%s2816_s30 + $0xc0] sm:$0xff]  ;;  %v300_v38 = vld [vmem:[%s2816_s30 + $0xc8] sm:$0xff]  ;;  %v350_v39 = vpack.c.bf16 %v298_v36, %v297_v35  ;;  %v301_v41 = vld [vmem:[%s2816_s30 + $0xd0] sm:$0xff] }
  0x60   : > { %2153 = vmatprep.mubr.msk.bf16.mxu0 %vm394_vm0, %v341_v10  ;;  %v351_v40 = vpack.c.bf16 %v300_v38, %v299_v37  ;;  %v302_v42 = vld [vmem:[%s2816_s30 + $0xd8] sm:$0xff]  ;;  %v303_v43 = vld [vmem:[%s2816_s30 + $0xe0] sm:$0xff]  ;;  %v304_v44 = vld [vmem:[%s2816_s30 + $0xe8] sm:$0xff] }
  0x61   : > { %v352_v45 = vpack.c.bf16 %v302_v42, %v301_v41  ;;  %v353_v46 = vpack.c.bf16 %v304_v44, %v303_v43  ;;  %v305_v47 = vld [vmem:[%s2816_s30 + $0xf0] sm:$0xff]  ;;  %v306_v48 = vld [vmem:[%s2816_s30 + $0xf8] sm:$0xff]  ;;  %v307_v49 = vld [vmem:[%s2816_s30 + $0x100] sm:$0xff] }
  0x62   : > { %v308_v50 = vld [vmem:[%s2816_s30 + $0x108] sm:$0xff]  ;;  %v354_v51 = vpack.c.bf16 %v306_v48, %v305_v47  ;;  %v309_v53 = vld [vmem:[%s2816_s30 + $0x110] sm:$0xff]  ;;  %v310_v54 = vld [vmem:[%s2816_s30 + $0x118] sm:$0xff] }
  0x63   : > { %v355_v52 = vpack.c.bf16 %v308_v50, %v307_v49  ;;  %v311_v55 = vld [vmem:[%s2816_s30 + $0x120] sm:$0xff]  ;;  %v312_v56 = vld [vmem:[%s2816_s30 + $0x128] sm:$0xff]  ;;  %v356_v57 = vpack.c.bf16 %v310_v54, %v309_v53  ;;  %v313_v59 = vld [vmem:[%s2816_s30 + $0x130] sm:$0xff] }
  0x64   : > { %v357_v58 = vpack.c.bf16 %v312_v56, %v311_v55  ;;  %v314_v60 = vld [vmem:[%s2816_s30 + $0x138] sm:$0xff]  ;;  %v315_v61 = vld [vmem:[%s2816_s30 + $0x140] sm:$0xff]  ;;  %v316_v62 = vld [vmem:[%s2816_s30 + $0x148] sm:$0xff] }
  0x65   : > { %v358_v63 = vpack.c.bf16 %v314_v60, %v313_v59  ;;  %v359_v0 = vpack.c.bf16 %v316_v62, %v315_v61  ;;  %v317_v1 = vld [vmem:[%s2816_s30 + $0x150] sm:$0xff]  ;;  %v318_v2 = vld [vmem:[%s2816_s30 + $0x158] sm:$0xff]  ;;  %v319_v3 = vld [vmem:[%s2816_s30 + $0x160] sm:$0xff] }
  0x66   : > { %v320_v4 = vld [vmem:[%s2816_s30 + $0x168] sm:$0xff]  ;;  %v360_v5 = vpack.c.bf16 %v318_v2, %v317_v1  ;;  %v321_v7 = vld [vmem:[%s2816_s30 + $0x170] sm:$0xff]  ;;  %v322_v8 = vld [vmem:[%s2816_s30 + $0x178] sm:$0xff] }
  0x67   : > { %2154 = vmatmul.mubr.msk.bf16.gmra.mxu0 %vm394_vm0, %v342_v15  ;;  %v361_v6 = vpack.c.bf16 %v320_v4, %v319_v3  ;;  %v323_v9 = vld [vmem:[%s2816_s30 + $0x180] sm:$0xff]  ;;  %v324_v10 = vld [vmem:[%s2816_s30 + $0x188] sm:$0xff]  ;;  %v362_v11 = vpack.c.bf16 %v322_v8, %v321_v7  ;;  %v325_v14 = vld [vmem:[%s2816_s30 + $0x190] sm:$0xff] }
  0x68   : > { %2157 = vmatprep.mubr.msk.bf16.mxu0 %vm394_vm0, %v343_v16  ;;  %v363_v12 = vpack.c.bf16 %v324_v10, %v323_v9  ;;  %v2360_v13 = vld [vmem:[#allocation7 + $0x18] sm:$0xff]   ;;  %v326_v15 = vld [vmem:[%s2816_s30 + $0x198] sm:$0xff]  ;;  %v327_v16 = vld [vmem:[%s2816_s30 + $0x1a0] sm:$0xff] }
  0x69   : > { %2213 = vmatprep.subr.bf16.mxu1 %v2360_v13  ;;  %v328_v17 = vld [vmem:[%s2816_s30 + $0x1a8] sm:$0xff]  ;;  %v2361_v18 = vld [vmem:[#allocation7 + $0x10] sm:$0xff]   ;;  %v364_v19 = vpack.c.bf16 %v326_v15, %v325_v14  ;;  %v330_v23 = vld [vmem:[%s2816_s30 + $0x1b8] sm:$0xff] }
  0x6a   : > { %2214 = vmatpush3.bf16.msra.mxu1 %v2360_v13  ;;  %v365_v20 = vpack.c.bf16 %v328_v17, %v327_v16  ;;  %v331_v24 = vld [vmem:[%s2816_s30 + $0x1c0] sm:$0xff]  ;;  %v332_v25 = vld [vmem:[%s2816_s30 + $0x1c8] sm:$0xff]  ;;  %v2363_v26 = vld [vmem:[#allocation7] sm:$0xff]  }
  0x6b   : > { %2215 = vmatprep.subr.bf16.mxu1 %v2361_v18  ;;  %v333_v29 = vld [vmem:[%s2816_s30 + $0x1d0] sm:$0xff]  ;;  %v334_v30 = vld [vmem:[%s2816_s30 + $0x1d8] sm:$0xff]  ;;  %v335_v31 = vld [vmem:[%s2816_s30 + $0x1e0] sm:$0xff] }
  0x6c   : > { %v336_v32 = vld [vmem:[%s2816_s30 + $0x1e8] sm:$0xff]  ;;  %v337_v35 = vld [vmem:[%s2816_s30 + $0x1f0] sm:$0xff]  ;;  %v338_v36 = vld [vmem:[%s2816_s30 + $0x1f8] sm:$0xff] }
  0x6d   : > { %v370_v37 = vpack.c.bf16 %v338_v36, %v337_v35  ;;  %v2925_v38 = vld [vmem:[%s3867_s2] ss:$0 sm:$0xff] }
  0x6e   : > { %2216 = vmatpush3.bf16.msra.mxu1 %v2361_v18 }
  0x6f   : > { %2158 = vmatmul.mubr.msk.bf16.gmra.mxu0 %vm394_vm0, %v344_v21  ;;  %v2362_v21 = vld [vmem:[#allocation7 + $0x8] sm:$0xff]  }
  0x70   : > { %2161 = vmatprep.mubr.msk.bf16.mxu0 %vm394_vm0, %v345_v22  ;;  %v329_v22 = vld [vmem:[%s2816_s30 + $0x1b0] sm:$0xff]  ;;  %2217 = vmatprep.subr.bf16.mxu1 %v2362_v21  ;;  %s2577_s30 = sshll.u32 %s2650_s29, 4  ;;  %s2578_s30 = int_to_ptr.vmem [resolvable:$false] %s2577_s30 }
  0x71   : > { %s2579_s24 = scalar_lea.vmem %s2578_s30, 16384  ;;  %p2580_p6 = scmp.lt.s32.totalorder %s3817_s7, %s2578_s30 }
  0x72   : > { %2218 = vmatpush3.bf16.msra.mxu1 %v2362_v21  ;;  %p2581_p12 = scmp.lt.s32.totalorder %s2579_s24, %s2573_s17 }
  0x73   : > { %2219 = vmatprep.subr.bf16.mxu1 %v2363_v26 }
  0x74   : > { %p2582_p7 = por %p2581_p12, %p2580_p6 }
  0x76   : > { %2220 = vmatpush3.bf16.msra.mxu1 %v2363_v26  ;;  %p2583_p9 = pnand %p2582_p7, %p2576_p2 }
  0x77   : > { %2162 = vmatmul.mubr.msk.bf16.gmra.mxu0 %vm394_vm0, %v346_v27  ;;  %v366_v27 = vpack.c.bf16 %v330_v23, %v329_v22 }
  0x78   : > { %2165 = vmatprep.mubr.msk.bf16.mxu0 %vm394_vm0, %v347_v28  ;;  %v367_v28 = vpack.c.bf16 %v332_v25, %v331_v24 }
  0x7f   : > { %2166 = vmatmul.mubr.msk.bf16.gmra.mxu0 %vm394_vm0, %v348_v33  ;;  %v368_v33 = vpack.c.bf16 %v334_v30, %v333_v29 }
  0x80   : > { %2169 = vmatprep.mubr.msk.bf16.mxu0 %vm394_vm0, %v349_v34  ;;  %v369_v34 = vpack.c.bf16 %v336_v32, %v335_v31 }
  0x87   : > { %2170 = vmatmul.mubr.msk.bf16.gmra.mxu0 %vm394_vm0, %v350_v39 }
  0x88   : > { %2173 = vmatprep.mubr.msk.bf16.mxu0 %vm394_vm0, %v351_v40 }
  0x8f   : > { %2174 = vmatmul.mubr.msk.bf16.gmra.mxu0 %vm394_vm0, %v352_v45 }
  0x90   : > { %2177 = vmatprep.mubr.msk.bf16.mxu0 %vm394_vm0, %v353_v46 }
  0x97   : > { %2178 = vmatmul.mubr.msk.bf16.gmra.mxu0 %vm394_vm0, %v354_v51 }
  0x98   : > { %2181 = vmatprep.mubr.msk.bf16.mxu0 %vm394_vm0, %v355_v52 }
  0x9f   : > { %2182 = vmatmul.mubr.msk.bf16.gmra.mxu0 %vm394_vm0, %v356_v57 }
  0xa0   : > { %2185 = vmatprep.mubr.msk.bf16.mxu0 %vm394_vm0, %v357_v58 }
  0xa7   : > { %2186 = vmatmul.mubr.msk.bf16.gmra.mxu0 %vm394_vm0, %v358_v63 }
  0xa8   : > { %2189 = vmatprep.mubr.msk.bf16.mxu0 %vm394_vm0, %v359_v0 }
  0xaf   : > { %2190 = vmatmul.mubr.msk.bf16.gmra.mxu0 %vm394_vm0, %v360_v5 }
  0xb0   : > { %2193 = vmatprep.mubr.msk.bf16.mxu0 %vm394_vm0, %v361_v6 }
  0xb7   : > { %2194 = vmatmul.mubr.msk.bf16.gmra.mxu0 %vm394_vm0, %v362_v11 }
  0xb8   : > { %2197 = vmatprep.mubr.msk.bf16.mxu0 %vm394_vm0, %v363_v12 }
  0xbf   : > { %2198 = vmatmul.mubr.msk.bf16.gmra.mxu0 %vm394_vm0, %v364_v19 }
  0xc0   : > { %2201 = vmatprep.mubr.msk.bf16.mxu0 %vm394_vm0, %v365_v20 }
  0xc7   : > { %2202 = vmatmul.mubr.msk.bf16.gmra.mxu0 %vm394_vm0, %v366_v27 }
  0xc8   : > { %2205 = vmatprep.mubr.msk.bf16.mxu0 %vm394_vm0, %v367_v28 }
  0xcf   : > { %2206 = vmatmul.mubr.msk.bf16.gmra.mxu0 %vm394_vm0, %v368_v33 }
  0xd0   : > { %2209 = vmatprep.mubr.msk.bf16.mxu0 %vm394_vm0, %v369_v34 }
  0xd7   : > { %2210 = vmatmul.mubr.msk.bf16.gmra.mxu0 %vm394_vm0, %v370_v37 }
 0x11f   : > { %v2151_v39 = vpop.f32.mrf.mxu0 }
 0x120   : > { %v534_v40 = vadd.f32 %v2151_v39, %v2925_v38 }
 0x121   : > { %v525_v41 = vpop.f32.mrf.mxu0 }
 0x122   : > { %v846_v42 = vmul.f32 0.044715, %v534_v40  ;;  %v526_v43 = vadd.f32 %v2925_v38, %v525_v41  ;;  %v2934_v61 = vmul.f32 0.5, %v534_v40 }
 0x123   : > { %v2152_v44 = vpop.f32.mrf.mxu0 }
 0x124   : > { %v910_v45 = vmul.f32 %v846_v42, %v534_v40  ;;  %v844_v46 = vmul.f32 0.044715, %v526_v43  ;;  %v537_v47 = vadd.f32 %v2152_v44, %v2925_v38  ;;  %v2932_v59 = vmul.f32 0.5, %v526_v43 }
 0x125   : > { %v528_v48 = vpop.f32.mrf.mxu0 }
 0x126   : > { %v974_v49 = vmul.f32 %v910_v45, %v534_v40  ;;  %v908_v50 = vmul.f32 %v844_v46, %v526_v43  ;;  %v847_v51 = vmul.f32 0.044715, %v537_v47  ;;  %v529_v52 = vadd.f32 %v2925_v38, %v528_v48 }
 0x127   : > { %v2155_v53 = vpop.f32.mrf.mxu0  ;;  %v2936_v62 = vmul.f32 0.5, %v537_v47 }
 0x128   : > { %v1038_v54 = vadd.f32 %v974_v49, %v534_v40  ;;  %v911_v55 = vmul.f32 %v847_v51, %v537_v47  ;;  %v845_v56 = vmul.f32 0.044715, %v529_v52  ;;  %v550_v57 = vadd.f32 %v2155_v53, %v2925_v38 }
 0x129   : > { %v541_v58 = vpop.f32.mrf.mxu0  ;;  %v972_v60 = vmul.f32 %v908_v50, %v526_v43  ;;  %v2939_v5 = vmul.f32 0.5, %v529_v52 }
 0x12a   : > { %v1102_v63 = vmul.f32 0.7978846, %v1038_v54  ;;  %v975_v0 = vmul.f32 %v911_v55, %v537_v47  ;;  %v909_v1 = vmul.f32 %v845_v56, %v529_v52  ;;  %v850_v2 = vmul.f32 0.044715, %v550_v57 }
 0x12b   : > { %v542_v3 = vadd.f32 %v2925_v38, %v541_v58  ;;  %v2156_v4 = vpop.f32.mrf.mxu0  ;;  %v1036_v6 = vadd.f32 %v972_v60, %v526_v43  ;;  %v2941_v7 = vmul.f32 0.5, %v550_v57 }
 0x12c   : > { %2364 = vtanh.f32 %v1102_v63  ;;  %v1039_v8 = vadd.f32 %v975_v0, %v537_v47  ;;  %v914_v9 = vmul.f32 %v850_v2, %v550_v57  ;;  %v553_v10 = vadd.f32 %v2156_v4, %v2925_v38 }
 0x12d   : > { %v848_v11 = vmul.f32 0.044715, %v542_v3  ;;  %v544_v12 = vpop.f32.mrf.mxu0  ;;  %v973_v13 = vmul.f32 %v909_v1, %v529_v52  ;;  %v1100_v14 = vmul.f32 0.7978846, %v1036_v6  ;;  %v2944_v15 = vmul.f32 0.5, %v542_v3 }
 0x12e   : > { %v1103_v16 = vmul.f32 0.7978846, %v1039_v8  ;;  %v978_v17 = vmul.f32 %v914_v9, %v550_v57  ;;  %v851_v18 = vmul.f32 0.044715, %v553_v10  ;;  %v545_v19 = vadd.f32 %v2925_v38, %v544_v12 }
 0x12f   : > { %v912_v20 = vmul.f32 %v848_v11, %v542_v3  ;;  %v2159_v21 = vpop.f32.mrf.mxu0  ;;  %v1037_v22 = vadd.f32 %v973_v13, %v529_v52  ;;  %2366 = vtanh.f32 %v1100_v14  ;;  %v2947_v23 = vmul.f32 0.5, %v553_v10 }
 0x130   : > { %2368 = vtanh.f32 %v1103_v16  ;;  %v1042_v24 = vadd.f32 %v978_v17, %v550_v57  ;;  %v915_v25 = vmul.f32 %v851_v18, %v553_v10  ;;  %v849_v26 = vmul.f32 0.044715, %v545_v19 }
 0x131   : > { %v976_v27 = vmul.f32 %v912_v20, %v542_v3  ;;  %v566_v28 = vadd.f32 %v2159_v21, %v2925_v38  ;;  %v557_v29 = vpop.f32.mrf.mxu0  ;;  %v1101_v30 = vmul.f32 0.7978846, %v1037_v22  ;;  %v2950_v31 = vmul.f32 0.5, %v545_v19 }
 0x132   : > { %v1106_v32 = vmul.f32 0.7978846, %v1042_v24  ;;  %v979_v33 = vmul.f32 %v915_v25, %v553_v10  ;;  %v913_v34 = vmul.f32 %v849_v26, %v545_v19  ;;  %v558_v35 = vadd.f32 %v2925_v38, %v557_v29 }
 0x133   : > { %v1040_v36 = vadd.f32 %v976_v27, %v542_v3  ;;  %v854_v37 = vmul.f32 0.044715, %v566_v28  ;;  %v2160_v39 = vpop.f32.mrf.mxu0  ;;  %2370 = vtanh.f32 %v1101_v30  ;;  %v2953_v40 = vmul.f32 0.5, %v566_v28 }
 0x134   : > { %2372 = vtanh.f32 %v1106_v32  ;;  %v1043_v41 = vadd.f32 %v979_v33, %v553_v10  ;;  %v977_v42 = vmul.f32 %v913_v34, %v545_v19  ;;  %v852_v43 = vmul.f32 0.044715, %v558_v35 }
 0x135   : > { %v1104_v44 = vmul.f32 0.7978846, %v1040_v36  ;;  %v918_v45 = vmul.f32 %v854_v37, %v566_v28  ;;  %v569_v46 = vadd.f32 %v2160_v39, %v2925_v38  ;;  %v560_v47 = vpop.f32.mrf.mxu0  ;;  %v2956_v48 = vmul.f32 0.5, %v558_v35 }
 0x136   : > { %v1107_v49 = vmul.f32 0.7978846, %v1043_v41  ;;  %v1041_v50 = vadd.f32 %v977_v42, %v545_v19  ;;  %v916_v51 = vmul.f32 %v852_v43, %v558_v35  ;;  %v561_v52 = vadd.f32 %v2925_v38, %v560_v47 }
 0x137   : > { %2374 = vtanh.f32 %v1104_v44  ;;  %v982_v53 = vmul.f32 %v918_v45, %v566_v28  ;;  %v855_v54 = vmul.f32 0.044715, %v569_v46  ;;  %v2163_v55 = vpop.f32.mrf.mxu0  ;;  %v2959_v56 = vmul.f32 0.5, %v569_v46 }
 0x138   : > { %2376 = vtanh.f32 %v1107_v49  ;;  %v1105_v57 = vmul.f32 0.7978846, %v1041_v50  ;;  %v980_v58 = vmul.f32 %v916_v51, %v558_v35  ;;  %v853_v60 = vmul.f32 0.044715, %v561_v52 }
 0x139   : > { %v2365_v63 = vpop.eup %2364  ;;  %v1046_v0 = vadd.f32 %v982_v53, %v566_v28  ;;  %v919_v1 = vmul.f32 %v855_v54, %v569_v46  ;;  %v2962_v2 = vadd.f32 %v2163_v55, %v2925_v38  ;;  %v573_v3 = vpop.f32.mrf.mxu0  ;;  %v2964_v4 = vmul.f32 0.5, %v561_v52 }
 0x13a   : > { %2378 = vtanh.f32 %v1105_v57  ;;  %v1044_v6 = vadd.f32 %v980_v58, %v558_v35  ;;  %v917_v8 = vmul.f32 %v853_v60, %v561_v52  ;;  %v2967_v9 = vadd.f32 %v2925_v38, %v573_v3 }
 0x13b   : > { %v1110_v10 = vmul.f32 0.7978846, %v1046_v0  ;;  %v983_v11 = vmul.f32 %v919_v1, %v569_v46  ;;  %v858_v12 = vmul.f32 0.044715, %v2962_v2  ;;  %v2164_v13 = vpop.f32.mrf.mxu0  ;;  %v2970_v14 = vadd.f32 1.0, %v2365_v63 }
 0x13c   : > { %v2367_v16 = vpop.eup %2366  ;;  %v1108_v17 = vmul.f32 0.7978846, %v1044_v6  ;;  %v981_v18 = vmul.f32 %v917_v8, %v561_v52  ;;  %v856_v19 = vmul.f32 0.044715, %v2967_v9  ;;  %v2974_v20 = vadd.f32 %v2164_v13, %v2925_v38 }
 0x13d   : > { %v2369_v21 = vpop.eup %2368  ;;  %2380 = vtanh.f32 %v1110_v10  ;;  %v1047_v22 = vadd.f32 %v983_v11, %v569_v46  ;;  %v922_v24 = vmul.f32 %v858_v12, %v2962_v2  ;;  %v576_v25 = vpop.f32.mrf.mxu0  ;;  %v1228_v26 = vadd.f32 1.0, %v2367_v16 }
 0x13e   : > { %2382 = vtanh.f32 %v1108_v17  ;;  %v1045_v27 = vadd.f32 %v981_v18, %v561_v52  ;;  %v920_v28 = vmul.f32 %v856_v19, %v2967_v9  ;;  %v859_v29 = vmul.f32 0.044715, %v2974_v20 }
 0x13f   : > { %v1111_v30 = vmul.f32 0.7978846, %v1047_v22  ;;  %v986_v32 = vmul.f32 %v922_v24, %v2962_v2  ;;  %v2981_v33 = vadd.f32 %v2925_v38, %v576_v25  ;;  %v2167_v34 = vpop.f32.mrf.mxu0  ;;  %v1292_v35 = vmul.f32 %v1228_v26, %v2932_v59 }
 0x140   : > { %v2371_v36 = vpop.eup %2370  ;;  %v1109_v37 = vmul.f32 0.7978846, %v1045_v27  ;;  %v984_v39 = vmul.f32 %v920_v28, %v2967_v9  ;;  %v923_v41 = vmul.f32 %v859_v29, %v2974_v20  ;;  %v2987_v42 = vadd.f32 %v2167_v34, %v2925_v38 }
 0x141   : > { %v2989_v43 = vpop.eup %2372  ;;  %2384 = vtanh.f32 %v1111_v30  ;;  %v1050_v44 = vadd.f32 %v986_v32, %v2962_v2  ;;  %v857_v45 = vmul.f32 0.044715, %v2981_v33  ;;  %v589_v46 = vpop.f32.mrf.mxu0  ;;  %v1229_v47 = vadd.f32 1.0, %v2371_v36 }
 0x142   : > { %2386 = vtanh.f32 %v1109_v37  ;;  %v1048_v59 = vadd.f32 %v984_v39, %v2967_v9  ;;  %v987_v49 = vmul.f32 %v923_v41, %v2974_v20  ;;  %v862_v50 = vmul.f32 0.044715, %v2987_v42 }
 0x143   : > { %v1114_v51 = vmul.f32 0.7978846, %v1050_v44  ;;  %v921_v52 = vmul.f32 %v857_v45, %v2981_v33  ;;  %v2998_v53 = vadd.f32 %v2925_v38, %v589_v46  ;;  %v2168_v54 = vpop.f32.mrf.mxu0  ;;  %v1293_v55 = vmul.f32 %v1229_v47, %v2939_v5 }
 0x144   : > { %v2375_v57 = vpop.eup %2374  ;;  %v1112_v58 = vmul.f32 0.7978846, %v1048_v59  ;;  %v1051_v60 = vadd.f32 %v987_v49, %v2974_v20  ;;  %v926_v63 = vmul.f32 %v862_v50, %v2987_v42  ;;  %v3004_v0 = vadd.f32 %v2168_v54, %v2925_v38 }
 0x145   : > { %v3006_v1 = vpop.eup %2376  ;;  %2388 = vtanh.f32 %v1114_v51  ;;  %v985_v3 = vmul.f32 %v921_v52, %v2981_v33  ;;  %v860_v6 = vmul.f32 0.044715, %v2998_v53  ;;  %v592_v8 = vpop.f32.mrf.mxu0  ;;  %v1356_v10 = vpack.c.bf16 %v1293_v55, %v1292_v35 }
 0x146   : > { %2390 = vtanh.f32 %v1112_v58  ;;  %v1115_v5 = vmul.f32 0.7978846, %v1051_v60  ;;  %v990_v11 = vmul.f32 %v926_v63, %v2987_v42  ;;  %v863_v12 = vmul.f32 0.044715, %v3004_v0 }
 0x147   : > { %v2379_v13 = vpop.eup %2378  ;;  %v1049_v16 = vadd.f32 %v985_v3, %v2981_v33  ;;  %v924_v17 = vmul.f32 %v860_v6, %v2998_v53  ;;  %v3015_v18 = vadd.f32 %v2925_v38, %v592_v8  ;;  %2221 = vmatprep.mubr.msk.bf16.mxu1 %vm1427_vm1, %v1356_v10  ;;  %v2171_v19 = vpop.f32.mrf.mxu0  ;;  %v1231_v22 = vadd.f32 1.0, %v2369_v21 }
 0x148   : > { %2392 = vtanh.f32 %v1115_v5  ;;  %v1054_v24 = vadd.f32 %v990_v11, %v2987_v42  ;;  %v927_v25 = vmul.f32 %v863_v12, %v3004_v0  ;;  %v3021_v26 = vadd.f32 %v2171_v19, %v2925_v38 }
 0x149   : > { %v1113_v27 = vmul.f32 0.7978846, %v1049_v16  ;;  %v988_v28 = vmul.f32 %v924_v17, %v2998_v53  ;;  %v861_v29 = vmul.f32 0.044715, %v3015_v18  ;;  %v1294_v30 = vmul.f32 %v2970_v14, %v2934_v61  ;;  %v605_v32 = vpop.f32.mrf.mxu0 }
 0x14a   : > { %v3027_v34 = vpop.eup %2380  ;;  %v1118_v21 = vmul.f32 0.7978846, %v1054_v24  ;;  %v991_v35 = vmul.f32 %v927_v25, %v3004_v0  ;;  %v866_v36 = vmul.f32 0.044715, %v3021_v26  ;;  %v1295_v37 = vmul.f32 %v1231_v22, %v2936_v62 }
 0x14b   : > { %v3032_v39 = vpop.eup %2382  ;;  %2394 = vtanh.f32 %v1113_v27  ;;  %v1052_v41 = vadd.f32 %v988_v28, %v2998_v53  ;;  %v925_v44 = vmul.f32 %v861_v29, %v3015_v18  ;;  %v3037_v45 = vadd.f32 %v2925_v38, %v605_v32  ;;  %v2172_v61 = vpop.f32.mrf.mxu0 }
 0x14c   : > { %2396 = vtanh.f32 %v1118_v21  ;;  %v1055_v14 = vadd.f32 %v991_v35, %v3004_v0  ;;  %v930_v46 = vmul.f32 %v866_v36, %v3021_v26  ;;  %v1357_v47 = vpack.c.bf16 %v1295_v37, %v1294_v30 }
 0x14d   : > { %v1116_v59 = vmul.f32 0.7978846, %v1052_v41  ;;  %v989_v62 = vmul.f32 %v925_v44, %v3015_v18  ;;  %v864_v49 = vmul.f32 0.044715, %v3037_v45  ;;  %v3044_v50 = vadd.f32 %v2172_v61, %v2925_v38  ;;  %v608_v51 = vpop.f32.mrf.mxu0 }
 0x14e   : > { %v3046_v52 = vpop.eup %2384  ;;  %v1119_v54 = vmul.f32 0.7978846, %v1055_v14  ;;  %v994_v55 = vmul.f32 %v930_v46, %v3021_v26  ;;  %2222 = vmatmul.mubr.msk.bf16.vlgmr.msra.gmra.mxu1 %vm1427_vm1, %v1357_v47  ;;  %v3051_v58 = vadd.f32 %v2925_v38, %v608_v51  ;;  %v1232_v60 = vadd.f32 1.0, %v2375_v57 }
 0x14f   : > { %v3053_v63 = vpop.eup %2386  ;;  %2398 = vtanh.f32 %v1116_v59  ;;  %v1053_v3 = vadd.f32 %v989_v62, %v3015_v18  ;;  %v928_v6 = vmul.f32 %v864_v49, %v3037_v45  ;;  %v867_v8 = vmul.f32 0.044715, %v3044_v50  ;;  %v2175_v10 = vpop.f32.mrf.mxu0 }
 0x150   : > { %2400 = vtanh.f32 %v1119_v54  ;;  %v1058_v5 = vadd.f32 %v994_v55, %v3021_v26  ;;  %v865_v11 = vmul.f32 0.044715, %v3051_v58  ;;  %v1233_v12 = vadd.f32 1.0, %v2379_v13 }
 0x151   : > { %v1117_v16 = vmul.f32 0.7978846, %v1053_v3  ;;  %v992_v17 = vmul.f32 %v928_v6, %v3037_v45  ;;  %v931_v57 = vmul.f32 %v867_v8, %v3044_v50  ;;  %v1296_v19 = vmul.f32 %v1232_v60, %v2944_v15  ;;  %v621_v22 = vpop.f32.mrf.mxu0 }
 0x152   : > { %v3063_v24 = vpop.eup %2388  ;;  %v1122_v25 = vmul.f32 0.7978846, %v1058_v5  ;;  %v929_v27 = vmul.f32 %v865_v11, %v3051_v58  ;;  %v1297_v28 = vmul.f32 %v1233_v12, %v2950_v31  ;;  %v3068_v29 = vadd.f32 %v2175_v10, %v2925_v38 }
 0x153   : > { %v3070_v30 = vpop.eup %2390  ;;  %2402 = vtanh.f32 %v1117_v16  ;;  %v1056_v13 = vadd.f32 %v992_v17, %v3037_v45  ;;  %v995_v32 = vmul.f32 %v931_v57, %v3044_v50  ;;  %v1234_v15 = vadd.f32 1.0, %v2989_v43  ;;  %v2176_v21 = vpop.f32.mrf.mxu0 }
 0x154   : > { %2404 = vtanh.f32 %v1122_v25  ;;  %v993_v35 = vmul.f32 %v929_v27, %v3051_v58  ;;  %v1358_v36 = vpack.c.bf16 %v1297_v28, %v1296_v19  ;;  %v870_v37 = vmul.f32 0.044715, %v3068_v29 }
 0x155   : > { %v3077_v31 = vpop.eup %2392  ;;  %v1120_v41 = vmul.f32 0.7978846, %v1056_v13  ;;  %v1059_v44 = vadd.f32 %v995_v32, %v3044_v50  ;;  %v1235_v61 = vadd.f32 1.0, %v3006_v1  ;;  %v1298_v14 = vmul.f32 %v1234_v15, %v2941_v7  ;;  %v624_v46 = vpop.f32.mrf.mxu0 }
 0x156   : > { %v1057_v47 = vadd.f32 %v993_v35, %v3051_v58  ;;  %2225 = vmatprep.mubr.msk.bf16.mxu1 %vm1427_vm1, %v1358_v36  ;;  %v934_v43 = vmul.f32 %v870_v37, %v3068_v29  ;;  %v3086_v59 = vadd.f32 %v2925_v38, %v621_v22  ;;  %v3089_v62 = vadd.f32 %v2176_v21, %v2925_v38 }
 0x157   : > { %2406 = vtanh.f32 %v1120_v41  ;;  %v1123_v49 = vmul.f32 0.7978846, %v1059_v44  ;;  %v1299_v51 = vmul.f32 %v1235_v61, %v2947_v23  ;;  %v3093_v1 = vadd.f32 %v2925_v38, %v624_v46  ;;  %v2179_v7 = vpop.f32.mrf.mxu0 }
 0x158   : > { %v3095_v54 = vpop.eup %2394  ;;  %v1121_v55 = vmul.f32 0.7978846, %v1057_v47  ;;  %v998_v60 = vmul.f32 %v934_v43, %v3068_v29  ;;  %v868_v3 = vmul.f32 0.044715, %v3086_v59  ;;  %v871_v6 = vmul.f32 0.044715, %v3089_v62 }
 0x159   : > { %v3100_v8 = vpop.eup %2396  ;;  %2408 = vtanh.f32 %v1123_v49  ;;  %v1359_v10 = vpack.c.bf16 %v1299_v51, %v1298_v14  ;;  %v869_v5 = vmul.f32 0.044715, %v3093_v1  ;;  %v1236_v23 = vadd.f32 1.0, %v3032_v39  ;;  %v637_v11 = vpop.f32.mrf.mxu0 }
 0x15a   : > { %2410 = vtanh.f32 %v1121_v55  ;;  %v1062_v12 = vadd.f32 %v998_v60, %v3068_v29  ;;  %v932_v16 = vmul.f32 %v868_v3, %v3086_v59  ;;  %v935_v17 = vmul.f32 %v871_v6, %v3089_v62 }
 0x15b   : > { %2226 = vmatmul.mubr.msk.bf16.gmra.mxu1 %vm1427_vm1, %v1359_v10  ;;  %v933_v57 = vmul.f32 %v869_v5, %v3093_v1  ;;  %v1237_v19 = vadd.f32 1.0, %v3053_v63  ;;  %v1300_v22 = vmul.f32 %v1236_v23, %v2956_v48  ;;  %v3112_v25 = vadd.f32 %v2179_v7, %v2925_v38  ;;  %v2180_v39 = vpop.f32.mrf.mxu0 }
 0x15c   : > { %v3114_v27 = vpop.eup %2398  ;;  %v1126_v28 = vmul.f32 0.7978846, %v1062_v12  ;;  %v996_v13 = vmul.f32 %v932_v16, %v3086_v59  ;;  %v999_v32 = vmul.f32 %v935_v17, %v3089_v62  ;;  %v1238_v15 = vadd.f32 1.0, %v3027_v34 }
 0x15d   : > { %v3119_v21 = vpop.eup %2400  ;;  %v997_v35 = vmul.f32 %v933_v57, %v3093_v1  ;;  %v1301_v63 = vmul.f32 %v1237_v19, %v2964_v4  ;;  %v874_v48 = vmul.f32 0.044715, %v3112_v25  ;;  %v1239_v36 = vadd.f32 1.0, %v3046_v52  ;;  %v640_v37 = vpop.f32.mrf.mxu0 }
 0x15e   : > { %2412 = vtanh.f32 %v1126_v28  ;;  %v1060_v41 = vadd.f32 %v996_v13, %v3086_v59  ;;  %v1063_v44 = vadd.f32 %v999_v32, %v3089_v62  ;;  %v1302_v61 = vmul.f32 %v1238_v15, %v2953_v40 }
 0x15f   : > { %v1061_v34 = vadd.f32 %v997_v35, %v3093_v1  ;;  %v1360_v14 = vpack.c.bf16 %v1301_v63, %v1300_v22  ;;  %v938_v46 = vmul.f32 %v874_v48, %v3112_v25  ;;  %v1303_v47 = vmul.f32 %v1239_v36, %v2959_v56  ;;  %v2183_v4 = vpop.f32.mrf.mxu0 }
 0x160   : > { %v3131_v43 = vpop.eup %2402  ;;  %v1124_v49 = vmul.f32 0.7978846, %v1060_v41  ;;  %v1127_v52 = vmul.f32 0.7978846, %v1063_v44  ;;  %v3134_v51 = vadd.f32 %v2925_v38, %v637_v11  ;;  %v3137_v7 = vadd.f32 %v2180_v39, %v2925_v38 }
 0x161   : > { %v3139_v55 = vpop.eup %2404  ;;  %v1125_v40 = vmul.f32 0.7978846, %v1061_v34  ;;  %2229 = vmatprep.mubr.msk.bf16.mxu1 %vm1427_vm1, %v1360_v14  ;;  %v1002_v60 = vmul.f32 %v938_v46, %v3112_v25  ;;  %v1361_v3 = vpack.c.bf16 %v1303_v47, %v1302_v61  ;;  %v3144_v56 = vadd.f32 %v2925_v38, %v640_v37  ;;  %v653_v6 = vpop.f32.mrf.mxu0 }
 0x162   : > { %2414 = vtanh.f32 %v1124_v49  ;;  %v872_v10 = vmul.f32 0.044715, %v3134_v51  ;;  %v875_v5 = vmul.f32 0.044715, %v3137_v7  ;;  %v792_v23 = vmul.f32 0.5, %v2967_v9 }
 0x163   : > { %2416 = vtanh.f32 %v1127_v52  ;;  %v1066_v11 = vadd.f32 %v1002_v60, %v3112_v25  ;;  %2230 = vmatmul.mubr.msk.bf16.gmra.mxu1 %vm1427_vm1, %v1361_v3  ;;  %v873_v12 = vmul.f32 0.044715, %v3144_v56  ;;  %v793_v16 = vmul.f32 0.5, %v2981_v33  ;;  %v2184_v17 = vpop.f32.mrf.mxu0 }
 0x164   : > { %v3153_v57 = vpop.eup %2406  ;;  %2418 = vtanh.f32 %v1125_v40  ;;  %v936_v19 = vmul.f32 %v872_v10, %v3134_v51  ;;  %v939_v22 = vmul.f32 %v875_v5, %v3137_v7  ;;  %v1240_v39 = vadd.f32 1.0, %v3070_v30 }
 0x165   : > { %v1130_v9 = vmul.f32 0.7978846, %v1066_v11  ;;  %v937_v28 = vmul.f32 %v873_v12, %v3144_v56  ;;  %v1241_v13 = vadd.f32 1.0, %v3095_v54  ;;  %v3161_v32 = vadd.f32 %v2183_v4, %v2925_v38  ;;  %v656_v15 = vpop.f32.mrf.mxu0 }
 0x166   : > { %v3163_v33 = vpop.eup %2408  ;;  %v1000_v35 = vmul.f32 %v936_v19, %v3134_v51  ;;  %v1003_v63 = vmul.f32 %v939_v22, %v3137_v7  ;;  %v1304_v48 = vmul.f32 %v1240_v39, %v792_v23  ;;  %v794_v36 = vmul.f32 0.5, %v2962_v2 }
 0x167   : > { %v3168_v37 = vpop.eup %2410  ;;  %2420 = vtanh.f32 %v1130_v9  ;;  %v1001_v30 = vmul.f32 %v937_v28, %v3144_v56  ;;  %v1305_v41 = vmul.f32 %v1241_v13, %v793_v16  ;;  %v878_v54 = vmul.f32 0.044715, %v3161_v32  ;;  %v2187_v44 = vpop.f32.mrf.mxu0 }
 0x168   : > { %v1064_v61 = vadd.f32 %v1000_v35, %v3134_v51  ;;  %v1067_v34 = vadd.f32 %v1003_v63, %v3137_v7  ;;  %v795_v14 = vmul.f32 0.5, %v2974_v20  ;;  %v1242_v46 = vadd.f32 1.0, %v3063_v24 }
 0x169   : > { %v1065_v47 = vadd.f32 %v1001_v30, %v3144_v56  ;;  %v1362_v2 = vpack.c.bf16 %v1305_v41, %v1304_v48  ;;  %v942_v4 = vmul.f32 %v878_v54, %v3161_v32  ;;  %v1243_v49 = vadd.f32 1.0, %v3077_v31  ;;  %v669_v52 = vpop.f32.mrf.mxu0 }
 0x16a   : > { %v1128_v40 = vmul.f32 0.7978846, %v1064_v61  ;;  %v1131_v60 = vmul.f32 0.7978846, %v1067_v34  ;;  %v1306_v3 = vmul.f32 %v1242_v46, %v794_v36  ;;  %v3180_v10 = vadd.f32 %v2925_v38, %v653_v6 }
 0x16b   : > { %v3182_v5 = vpop.eup %2412  ;;  %v1129_v23 = vmul.f32 0.7978846, %v1065_v47  ;;  %2233 = vmatprep.mubr.msk.bf16.mxu1 %vm1427_vm1, %v1362_v2  ;;  %v1006_v20 = vmul.f32 %v942_v4, %v3161_v32  ;;  %v1307_v24 = vmul.f32 %v1243_v49, %v795_v14  ;;  %v3187_v11 = vadd.f32 %v2184_v17, %v2925_v38  ;;  %v2188_v12 = vpop.f32.mrf.mxu0 }
 0x16c   : > { %2422 = vtanh.f32 %v1128_v40  ;;  %v876_v31 = vmul.f32 0.044715, %v3180_v10  ;;  %v3191_v16 = vadd.f32 %v2925_v38, %v656_v15  ;;  %v796_v6 = vmul.f32 0.5, %v2998_v53 }
 0x16d   : > { %2424 = vtanh.f32 %v1131_v60  ;;  %v1070_v19 = vadd.f32 %v1006_v20, %v3161_v32  ;;  %v1363_v22 = vpack.c.bf16 %v1307_v24, %v1306_v3  ;;  %v879_v39 = vmul.f32 0.044715, %v3187_v11  ;;  %v672_v9 = vpop.f32.mrf.mxu0 }
 0x16e   : > { %2426 = vtanh.f32 %v1129_v23  ;;  %v940_v17 = vmul.f32 %v876_v31, %v3180_v10  ;;  %v877_v28 = vmul.f32 0.044715, %v3191_v16  ;;  %v797_v13 = vmul.f32 0.5, %v3015_v18 }
 0x16f   : > { %v3199_v35 = vpop.eup %2414  ;;  %v1134_v15 = vmul.f32 0.7978846, %v1070_v19  ;;  %2234 = vmatmul.mubr.msk.bf16.gmra.mxu1 %vm1427_vm1, %v1363_v22  ;;  %v943_v53 = vmul.f32 %v879_v39, %v3187_v11  ;;  %v1244_v63 = vadd.f32 1.0, %v3114_v27  ;;  %v1245_v48 = vadd.f32 1.0, %v3131_v43  ;;  %v2191_v36 = vpop.f32.mrf.mxu0 }
 0x170   : > { %v3205_v30 = vpop.eup %2416  ;;  %v1004_v41 = vmul.f32 %v940_v17, %v3180_v10  ;;  %v941_v54 = vmul.f32 %v877_v28, %v3191_v16  ;;  %v3210_v18 = vadd.f32 %v2187_v44, %v2925_v38  ;;  %v798_v61 = vmul.f32 0.5, %v2987_v42 }
 0x171   : > { %v3213_v34 = vpop.eup %2418  ;;  %2428 = vtanh.f32 %v1134_v15  ;;  %v1007_v14 = vmul.f32 %v943_v53, %v3187_v11  ;;  %v1308_v27 = vmul.f32 %v1244_v63, %v796_v6  ;;  %v1309_v46 = vmul.f32 %v1245_v48, %v797_v13  ;;  %v3216_v43 = vpop.f32.mrf.mxu0 }
 0x172   : > { %v1068_v47 = vadd.f32 %v1004_v41, %v3180_v10  ;;  %v1005_v2 = vmul.f32 %v941_v54, %v3191_v16  ;;  %v882_v4 = vmul.f32 0.044715, %v3210_v18  ;;  %v799_v44 = vmul.f32 0.5, %v3004_v0 }
 0x173   : > { %v1071_v49 = vadd.f32 %v1007_v14, %v3187_v11  ;;  %v1364_v42 = vpack.c.bf16 %v1309_v46, %v1308_v27  ;;  %v1246_v40 = vadd.f32 1.0, %v3100_v8  ;;  %v1247_v60 = vadd.f32 1.0, %v3119_v21  ;;  %v3225_v3 = vpop.f32.mrf.mxu0 }
 0x174   : > { %v3227_v23 = vpop.eup %2420  ;;  %v1132_v20 = vmul.f32 0.7978846, %v1068_v47  ;;  %v1069_v24 = vadd.f32 %v1005_v2, %v3191_v16  ;;  %v946_v31 = vmul.f32 %v882_v4, %v3210_v18  ;;  %v3232_v6 = vadd.f32 %v2925_v38, %v669_v52 }
 0x175   : > { %v1135_v0 = vmul.f32 0.7978846, %v1071_v49  ;;  %2237 = vmatprep.mubr.msk.bf16.mxu1 %vm1427_vm1, %v1364_v42  ;;  %v1310_v19 = vmul.f32 %v1246_v40, %v798_v61  ;;  %v1311_v22 = vmul.f32 %v1247_v60, %v799_v44  ;;  %v3236_v8 = vadd.f32 %v2188_v12, %v2925_v38  ;;  %v688_v21 = vpop.f32.mrf.mxu0 }
 0x176   : > { %2430 = vtanh.f32 %v1132_v20  ;;  %v1133_v39 = vmul.f32 0.7978846, %v1069_v24  ;;  %v1010_v17 = vmul.f32 %v946_v31, %v3210_v18  ;;  %v880_v28 = vmul.f32 0.044715, %v3232_v6 }
 0x177   : > { %2432 = vtanh.f32 %v1135_v0  ;;  %v1365_v13 = vpack.c.bf16 %v1311_v22, %v1310_v19  ;;  %v883_v52 = vmul.f32 0.044715, %v3236_v8  ;;  %v3242_v15 = vadd.f32 %v2925_v38, %v672_v9  ;;  %v3244_v53 = vpop.f32.mrf.mxu0 }
 0x178   : > { %2434 = vtanh.f32 %v1133_v39  ;;  %v1074_v12 = vadd.f32 %v1010_v17, %v3210_v18  ;;  %v944_v63 = vmul.f32 %v880_v28, %v3232_v6  ;;  %v800_v61 = vmul.f32 0.5, %v3037_v45 }
 0x179   : > { %v3248_v48 = vpop.eup %2422  ;;  %2238 = vmatmul.mubr.msk.bf16.gmra.mxu1 %vm1427_vm1, %v1365_v13  ;;  %v947_v41 = vmul.f32 %v883_v52, %v3236_v8  ;;  %v881_v54 = vmul.f32 0.044715, %v3242_v15  ;;  %v1248_v9 = vadd.f32 1.0, %v3153_v57  ;;  %v3255_v14 = vpop.f32.mrf.mxu0  ;;  %v801_v47 = vmul.f32 0.5, %v3051_v58 }
 0x17a   : > { %v3257_v27 = vpop.eup %2424  ;;  %v1008_v46 = vmul.f32 %v944_v63, %v3232_v6  ;;  %v1249_v2 = vadd.f32 1.0, %v3168_v37  ;;  %v3263_v4 = vadd.f32 %v2191_v36, %v2925_v38  ;;  %v1138_v49 = vmul.f32 0.7978846, %v1074_v12 }
 0x17b   : > { %v3265_v44 = vpop.eup %2426  ;;  %v1011_v45 = vmul.f32 %v947_v41, %v3236_v8  ;;  %v945_v57 = vmul.f32 %v881_v54, %v3242_v15  ;;  %v1312_v42 = vmul.f32 %v1248_v9, %v800_v61  ;;  %v3269_v40 = vpop.f32.mrf.mxu0  ;;  %v802_v37 = vmul.f32 0.5, %v3021_v26 }
 0x17c   : > { %v1072_v60 = vadd.f32 %v1008_v46, %v3232_v6  ;;  %v1313_v20 = vmul.f32 %v1249_v2, %v801_v47  ;;  %v886_v58 = vmul.f32 0.044715, %v3263_v4  ;;  %v803_v31 = vmul.f32 0.5, %v3044_v50 }
 0x17d   : > { %v1075_v36 = vadd.f32 %v1011_v45, %v3236_v8  ;;  %v1009_v24 = vmul.f32 %v945_v57, %v3242_v15  ;;  %v1250_v0 = vadd.f32 1.0, %v3139_v55  ;;  %v3278_v19 = vpop.f32.mrf.mxu0  ;;  %v1251_v13 = vadd.f32 1.0, %v3163_v33 }
 0x17e   : > { %v3280_v22 = vpop.eup %2428  ;;  %v1136_v39 = vmul.f32 0.7978846, %v1072_v60  ;;  %v1366_v17 = vpack.c.bf16 %v1313_v20, %v1312_v42  ;;  %v950_v28 = vmul.f32 %v886_v58, %v3263_v4  ;;  %2436 = vtanh.f32 %v1138_v49 }
 0x17f   : > { %v1139_v26 = vmul.f32 0.7978846, %v1075_v36  ;;  %v1073_v52 = vadd.f32 %v1009_v24, %v3242_v15  ;;  %v3287_v12 = vadd.f32 %v2925_v38, %v3216_v43  ;;  %v3289_v50 = vpop.f32.mrf.mxu0  ;;  %v1314_v63 = vmul.f32 %v1250_v0, %v802_v37 }
 0x180   : > { %2241 = vmatprep.mubr.msk.bf16.mxu1 %vm1427_vm1, %v1366_v17  ;;  %v1014_v55 = vmul.f32 %v950_v28, %v3263_v4  ;;  %v1315_v41 = vmul.f32 %v1251_v13, %v803_v31  ;;  %v3295_v54 = vadd.f32 %v3225_v3, %v2925_v38  ;;  %2438 = vtanh.f32 %v1136_v39 }
 0x181   : > { %v1137_v33 = vmul.f32 0.7978846, %v1073_v52  ;;  %v884_v61 = vmul.f32 0.044715, %v3287_v12  ;;  %v3299_v9 = vadd.f32 %v2925_v38, %v688_v21  ;;  %v3301_v43 = vpop.f32.mrf.mxu0  ;;  %2440 = vtanh.f32 %v1139_v26 }
 0x182   : > { %v1078_v46 = vadd.f32 %v1014_v55, %v3263_v4  ;;  %v1367_v47 = vpack.c.bf16 %v1315_v41, %v1314_v63  ;;  %v887_v2 = vmul.f32 0.044715, %v3295_v54  ;;  %v804_v57 = vmul.f32 0.5, %v3086_v59 }
 0x183   : > { %v3305_v49 = vpop.eup %2430  ;;  %2442 = vtanh.f32 %v1137_v33  ;;  %v948_v3 = vmul.f32 %v884_v61, %v3287_v12  ;;  %v885_v45 = vmul.f32 0.044715, %v3299_v9  ;;  %v3310_v42 = vpop.f32.mrf.mxu0  ;;  %v805_v20 = vmul.f32 0.5, %v3093_v1 }
 0x184   : > { %v3312_v21 = vpop.eup %2432  ;;  %2242 = vmatmul.mubr.msk.bf16.gmra.mxu1 %vm1427_vm1, %v1367_v47  ;;  %v951_v60 = vmul.f32 %v887_v2, %v3295_v54  ;;  %v1252_v58 = vadd.f32 1.0, %v3199_v35  ;;  %v1253_v37 = vadd.f32 1.0, %v3213_v34  ;;  %v1142_v24 = vmul.f32 0.7978846, %v1078_v46 }
 0x185   : > { %v3319_v36 = vpop.eup %2434  ;;  %v1012_v31 = vmul.f32 %v948_v3, %v3287_v12  ;;  %v949_v59 = vmul.f32 %v885_v45, %v3299_v9  ;;  %v3325_v0 = vadd.f32 %v3244_v53, %v2925_v38  ;;  %v3327_v39 = vpop.f32.mrf.mxu0  ;;  %v806_v35 = vmul.f32 0.5, %v3068_v29 }
 0x186   : > { %v1015_v17 = vmul.f32 %v951_v60, %v3295_v54  ;;  %v1316_v1 = vmul.f32 %v1252_v58, %v804_v57  ;;  %v1317_v28 = vmul.f32 %v1253_v37, %v805_v20  ;;  %v807_v52 = vmul.f32 0.5, %v3089_v62  ;;  %v3361_v58 = vld [vmem:[%s3867_s2] ss:$0 sm:$0xff] }
 0x187   : > { %v1076_v34 = vadd.f32 %v1012_v31, %v3287_v12  ;;  %v1013_v13 = vmul.f32 %v949_v59, %v3299_v9  ;;  %v890_v26 = vmul.f32 0.044715, %v3325_v0  ;;  %v3335_v55 = vpop.f32.mrf.mxu0  ;;  %v1254_v41 = vadd.f32 1.0, %v3182_v5 }
 0x188   : > { %v1079_v53 = vadd.f32 %v1015_v17, %v3295_v54  ;;  %v1368_v63 = vpack.c.bf16 %v1317_v28, %v1316_v1  ;;  %v1255_v33 = vadd.f32 1.0, %v3205_v30  ;;  %v3344_v47 = vadd.f32 %v2925_v38, %v3255_v14 }
 0x189   : > { %v1140_v61 = vmul.f32 0.7978846, %v1076_v34  ;;  %v1077_v29 = vadd.f32 %v1013_v13, %v3299_v9  ;;  %v954_v46 = vmul.f32 %v890_v26, %v3325_v0  ;;  %v1318_v62 = vmul.f32 %v1254_v41, %v806_v35  ;;  %v3353_v57 = vpop.f32.mrf.mxu0 }
 0x18a   : > { %v1143_v2 = vmul.f32 0.7978846, %v1079_v53  ;;  %2245 = vmatprep.mubr.msk.bf16.mxu1 %vm1427_vm1, %v1368_v63  ;;  %v1319_v3 = vmul.f32 %v1255_v33, %v807_v52  ;;  %v3349_v45 = vadd.f32 %v3269_v40, %v2925_v38  ;;  %2444 = vtanh.f32 %v1142_v24 }
 0x18b   : > { %v1018_v5 = vmul.f32 %v954_v46, %v3325_v0  ;;  %v888_v30 = vmul.f32 0.044715, %v3344_v47  ;;  %v3355_v60 = vpop.eup %2436  ;;  %2446 = vtanh.f32 %v1140_v61  ;;  %v3365_v38 = vadd.f32 %v3361_v58, %v3278_v19  ;;  %v3385_v52 = vpop.f32.mrf.mxu0 }
 0x18c   : > { %v1369_v14 = vpack.c.bf16 %v1319_v3, %v1318_v62  ;;  %v891_v20 = vmul.f32 0.044715, %v3349_v45  ;;  %2448 = vtanh.f32 %v1143_v2  ;;  %v1141_v40 = vmul.f32 0.7978846, %v1077_v29 }
 0x18d   : > { %v1082_v37 = vadd.f32 %v1018_v5, %v3325_v0  ;;  %v952_v24 = vmul.f32 %v888_v30, %v3344_v47  ;;  %v3369_v31 = vpop.eup %2438  ;;  %v889_v17 = vmul.f32 0.044715, %v3365_v38  ;;  %v808_v1 = vmul.f32 0.5, %v3134_v51 }
 0x18e   : > { %2246 = vmatmul.mubr.msk.bf16.gmra.mxu1 %vm1427_vm1, %v1369_v14  ;;  %v955_v59 = vmul.f32 %v891_v20, %v3349_v45  ;;  %v1256_v28 = vadd.f32 1.0, %v3248_v48  ;;  %v3376_v19 = vpop.eup %2440  ;;  %v809_v34 = vmul.f32 0.5, %v3144_v56  ;;  %v1257_v13 = vadd.f32 1.0, %v3265_v44  ;;  %v3400_v14 = vpop.f32.mrf.mxu0 }
 0x18f   : > { %v1016_v35 = vmul.f32 %v952_v24, %v3344_v47  ;;  %v3383_v26 = vadd.f32 %v3361_v58, %v3289_v50  ;;  %v1146_v63 = vmul.f32 0.7978846, %v1082_v37  ;;  %v953_v48 = vmul.f32 %v889_v17, %v3365_v38 }
 0x190   : > { %v3387_v53 = vpop.eup %2442  ;;  %v1019_v51 = vmul.f32 %v955_v59, %v3349_v45  ;;  %v1320_v41 = vmul.f32 %v1256_v28, %v808_v1  ;;  %v1321_v61 = vmul.f32 %v1257_v13, %v809_v34  ;;  %v810_v44 = vmul.f32 0.5, %v3112_v25  ;;  %v3420_v28 = vpop.f32.mrf.mxu0 }
 0x191   : > { %v1080_v33 = vadd.f32 %v1016_v35, %v3344_v47  ;;  %v894_v56 = vmul.f32 0.044715, %v3383_v26  ;;  %v1017_v29 = vmul.f32 %v953_v48, %v3365_v38  ;;  %v811_v46 = vmul.f32 0.5, %v3137_v7 }
 0x192   : > { %v1083_v50 = vadd.f32 %v1019_v51, %v3349_v45  ;;  %v1258_v2 = vadd.f32 1.0, %v3227_v23  ;;  %v1370_v3 = vpack.c.bf16 %v1321_v61, %v1320_v41  ;;  %v1259_v30 = vadd.f32 1.0, %v3257_v27 }
 0x193   : > { %v1144_v62 = vmul.f32 0.7978846, %v1080_v33  ;;  %v958_v5 = vmul.f32 %v894_v56, %v3383_v26  ;;  %2450 = vtanh.f32 %v1141_v40  ;;  %v3404_v25 = vadd.f32 %v3361_v58, %v3301_v43 }
 0x194   : > { %v1147_v20 = vmul.f32 0.7978846, %v1083_v50  ;;  %2249 = vmatprep.mubr.msk.bf16.mxu1 %vm1427_vm1, %v1370_v3  ;;  %v1322_v37 = vmul.f32 %v1258_v2, %v810_v44  ;;  %v1323_v23 = vmul.f32 %v1259_v30, %v811_v46  ;;  %v3410_v24 = vadd.f32 %v3361_v58, %v3310_v42  ;;  %v3443_v2 = vpop.f32.mrf.mxu0 }
 0x195   : > { %v1022_v7 = vmul.f32 %v958_v5, %v3383_v26  ;;  %2452 = vtanh.f32 %v1146_v63  ;;  %v1081_v27 = vadd.f32 %v1017_v29, %v3365_v38  ;;  %v892_v40 = vmul.f32 0.044715, %v3404_v25 }
 0x196   : > { %v3416_v59 = vadd.f32 %v3361_v58, %v3327_v39  ;;  %2454 = vtanh.f32 %v1144_v62  ;;  %v1371_v17 = vpack.c.bf16 %v1323_v23, %v1322_v37  ;;  %v895_v1 = vmul.f32 0.044715, %v3410_v24 }
 0x197   : > { %v1086_v43 = vadd.f32 %v1022_v7, %v3383_v26  ;;  %v3422_v35 = vpop.eup %2444  ;;  %2456 = vtanh.f32 %v1147_v20  ;;  %v956_v42 = vmul.f32 %v892_v40, %v3404_v25  ;;  %v812_v13 = vmul.f32 0.5, %v3180_v10 }
 0x198   : > { %v893_v34 = vmul.f32 0.044715, %v3416_v59  ;;  %v3427_v63 = vpop.eup %2446  ;;  %2250 = vmatmul.mubr.msk.bf16.gmra.mxu1 %vm1427_vm1, %v1371_v17  ;;  %v959_v39 = vmul.f32 %v895_v1, %v3410_v24  ;;  %v813_v51 = vmul.f32 0.5, %v3191_v16  ;;  %v1260_v48 = vadd.f32 1.0, %v3305_v49 }
 0x199   : > { %v1261_v41 = vadd.f32 1.0, %v3319_v36  ;;  %v3434_v33 = vpop.eup %2448  ;;  %v1145_v61 = vmul.f32 0.7978846, %v1081_v27  ;;  %v1020_v56 = vmul.f32 %v956_v42, %v3404_v25  ;;  %v3440_v10 = vadd.f32 %v3361_v58, %v3335_v55 }
 0x19a   : > { %v957_v44 = vmul.f32 %v893_v34, %v3416_v59  ;;  %v1150_v50 = vmul.f32 0.7978846, %v1086_v43  ;;  %v1023_v29 = vmul.f32 %v959_v39, %v3410_v24  ;;  %v1324_v46 = vmul.f32 %v1260_v48, %v812_v13 }
 0x19b   : > { %v1325_v16 = vmul.f32 %v1261_v41, %v813_v51  ;;  %v1084_v49 = vadd.f32 %v1020_v56, %v3404_v25  ;;  %v898_v62 = vmul.f32 0.044715, %v3440_v10  ;;  %v814_v3 = vmul.f32 0.5, %v3161_v32 }
 0x19c   : > { %v1021_v36 = vmul.f32 %v957_v44, %v3416_v59  ;;  %v815_v30 = vmul.f32 0.5, %v3187_v11  ;;  %v1262_v55 = vadd.f32 1.0, %v3280_v22  ;;  %v1263_v20 = vadd.f32 1.0, %v3312_v21  ;;  %v2208_v22 = vpop.f32.mrf.mxu0 }
 0x19d   : > { %v1372_v5 = vpack.c.bf16 %v1325_v16, %v1324_v46  ;;  %v1148_v7 = vmul.f32 0.7978846, %v1084_v49  ;;  %v1087_v37 = vadd.f32 %v1023_v29, %v3410_v24  ;;  %v962_v23 = vmul.f32 %v898_v62, %v3440_v10 }
 0x19e   : > { %v3456_v27 = vadd.f32 %v3361_v58, %v3353_v57  ;;  %2458 = vtanh.f32 %v1145_v61  ;;  %v1326_v32 = vmul.f32 %v1262_v55, %v814_v3  ;;  %v1327_v40 = vmul.f32 %v1263_v20, %v815_v30 }
 0x19f   : > { %2253 = vmatprep.mubr.msk.bf16.mxu1 %vm1427_vm1, %v1372_v5  ;;  %v3461_v11 = vadd.f32 %v3361_v58, %v3385_v52  ;;  %2460 = vtanh.f32 %v1150_v50  ;;  %v1026_v21 = vmul.f32 %v962_v23, %v3440_v10  ;;  %v1085_v57 = vadd.f32 %v1021_v36, %v3416_v59 }
 0x1a0   : > { %v896_v43 = vmul.f32 0.044715, %v3456_v27  ;;  %v3465_v17 = vpop.eup %2450  ;;  %v1373_v1 = vpack.c.bf16 %v1327_v40, %v1326_v32  ;;  %v3471_v34 = vadd.f32 %v3361_v58, %v3400_v14  ;;  %2462 = vtanh.f32 %v1148_v7  ;;  %v752_v14 = vpop.f32.mrf.mxu0 }
 0x1a1   : > { %v899_v42 = vmul.f32 0.044715, %v3461_v11  ;;  %v1151_v52 = vmul.f32 0.7978846, %v1087_v37  ;;  %v1090_v13 = vadd.f32 %v1026_v21, %v3440_v10  ;;  %v816_v61 = vmul.f32 0.5, %v3232_v6 }
 0x1a2   : > { %v960_v39 = vmul.f32 %v896_v43, %v3456_v27  ;;  %v3475_v51 = vpop.eup %2452  ;;  %2254 = vmatmul.mubr.msk.bf16.gmra.mxu1 %vm1427_vm1, %v1373_v1  ;;  %v897_v41 = vmul.f32 0.044715, %v3471_v34  ;;  %v1264_v56 = vadd.f32 1.0, %v3369_v31  ;;  %v817_v29 = vmul.f32 0.5, %v3242_v15  ;;  %v2211_v7 = vpop.f32.mrf.mxu0 }
 0x1a3   : > { %v963_v48 = vmul.f32 %v899_v42, %v3461_v11  ;;  %v3482_v44 = vpop.eup %2454  ;;  %v1265_v46 = vadd.f32 1.0, %v3387_v53  ;;  %v3489_v16 = vadd.f32 %v3361_v58, %v3420_v28  ;;  %v1149_v36 = vmul.f32 0.7978846, %v1085_v57 }
 0x1a4   : > { %v1024_v50 = vmul.f32 %v960_v39, %v3456_v27  ;;  %v3491_v49 = vpop.eup %2456  ;;  %v1154_v62 = vmul.f32 0.7978846, %v1090_v13  ;;  %v961_v31 = vmul.f32 %v897_v41, %v3471_v34  ;;  %v1328_v5 = vmul.f32 %v1264_v56, %v816_v61 }
 0x1a5   : > { %v1027_v6 = vmul.f32 %v963_v48, %v3461_v11  ;;  %v1329_v30 = vmul.f32 %v1265_v46, %v817_v29  ;;  %v902_v15 = vmul.f32 0.044715, %v3489_v16  ;;  %v818_v28 = vmul.f32 0.5, %v3210_v18 }
 0x1a6   : > { %v1088_v3 = vadd.f32 %v1024_v50, %v3456_v27  ;;  %v1025_v55 = vmul.f32 %v961_v31, %v3471_v34  ;;  %v1266_v20 = vadd.f32 1.0, %v3355_v60  ;;  %v819_v32 = vmul.f32 0.5, %v3236_v8 }
 0x1a7   : > { %v1091_v53 = vadd.f32 %v1027_v6, %v3461_v11  ;;  %v1374_v37 = vpack.c.bf16 %v1329_v30, %v1328_v5  ;;  %v966_v23 = vmul.f32 %v902_v15, %v3489_v16  ;;  %v1267_v40 = vadd.f32 1.0, %v3376_v19 }
 0x1a8   : > { %2464 = vtanh.f32 %v1151_v52  ;;  %v1152_v21 = vmul.f32 0.7978846, %v1088_v3  ;;  %v1089_v43 = vadd.f32 %v1025_v55, %v3471_v34  ;;  %v3507_v57 = vadd.f32 %v3361_v58, %v3443_v2  ;;  %v765_v52 = vpop.f32.mrf.mxu0 }
 0x1a9   : > { %2466 = vtanh.f32 %v1149_v36  ;;  %2257 = vmatprep.mubr.msk.bf16.mxu1 %vm1427_vm1, %v1374_v37  ;;  %v1330_v18 = vmul.f32 %v1266_v20, %v818_v28  ;;  %v1331_v60 = vmul.f32 %v1267_v40, %v819_v32  ;;  %v3511_v1 = vadd.f32 %v3361_v58, %v2208_v22 }
 0x1aa   : > { %2468 = vtanh.f32 %v1154_v62  ;;  %v1030_v8 = vmul.f32 %v966_v23, %v3489_v16  ;;  %v900_v19 = vmul.f32 0.044715, %v3507_v57  ;;  %v3516_v42 = vadd.f32 %v3361_v58, %v752_v14  ;;  %v2212_v5 = vpop.f32.mrf.mxu0 }
 0x1ab   : > { %v3518_v13 = vpop.eup %2458  ;;  %v1155_v2 = vmul.f32 0.7978846, %v1091_v53  ;;  %v1153_v39 = vmul.f32 0.7978846, %v1089_v43  ;;  %v1375_v48 = vpack.c.bf16 %v1331_v60, %v1330_v18  ;;  %v903_v41 = vmul.f32 0.044715, %v3511_v1 }
 0x1ac   : > { %v3521_v61 = vpop.eup %2460  ;;  %2470 = vtanh.f32 %v1152_v21  ;;  %v964_v22 = vmul.f32 %v900_v19, %v3507_v57  ;;  %v901_v56 = vmul.f32 0.044715, %v3516_v42  ;;  %v820_v50 = vmul.f32 0.5, %v3287_v12  ;;  %v768_v43 = vpop.f32.mrf.mxu0 }
 0x1ad   : > { %2258 = vmatmul.mubr.msk.bf16.gmra.mxu1 %vm1427_vm1, %v1375_v48  ;;  %v967_v14 = vmul.f32 %v903_v41, %v3511_v1  ;;  %v821_v29 = vmul.f32 0.5, %v3299_v9  ;;  %v1268_v46 = vadd.f32 1.0, %v3427_v63  ;;  %v1269_v36 = vadd.f32 1.0, %v3465_v17  ;;  %v3531_v62 = vpop.eup %2462 }
 0x1ae   : > { %v1094_v6 = vadd.f32 %v1030_v8, %v3489_v16  ;;  %v1028_v31 = vmul.f32 %v964_v22, %v3507_v57  ;;  %v965_v3 = vmul.f32 %v901_v56, %v3516_v42  ;;  %v3537_v12 = vadd.f32 %v3361_v58, %v2211_v7 }
 0x1af   : > { %2472 = vtanh.f32 %v1153_v39  ;;  %v1031_v30 = vmul.f32 %v967_v14, %v3511_v1  ;;  %v1332_v9 = vmul.f32 %v1268_v46, %v820_v50  ;;  %v1333_v15 = vmul.f32 %v1269_v36, %v821_v29 }
 0x1b0   : > { %v1092_v63 = vadd.f32 %v1028_v31, %v3507_v57  ;;  %v1029_v17 = vmul.f32 %v965_v3, %v3516_v42  ;;  %v906_v53 = vmul.f32 0.044715, %v3537_v12  ;;  %v822_v55 = vmul.f32 0.5, %v3263_v4 }
 0x1b1   : > { %v1376_v28 = vpack.c.bf16 %v1333_v15, %v1332_v9  ;;  %v823_v20 = vmul.f32 0.5, %v3295_v54  ;;  %v1270_v7 = vadd.f32 1.0, %v3422_v35  ;;  %v1271_v37 = vadd.f32 1.0, %v3434_v33 }
 0x1b2   : > { %v1156_v23 = vmul.f32 0.7978846, %v1092_v63  ;;  %v1095_v32 = vadd.f32 %v1031_v30, %v3511_v1  ;;  %v1093_v40 = vadd.f32 %v1029_v17, %v3516_v42  ;;  %v3550_v21 = vadd.f32 %v3361_v58, %v765_v52 }
 0x1b3   : > { %2261 = vmatprep.mubr.msk.bf16.mxu1 %vm1427_vm1, %v1376_v28  ;;  %v970_v4 = vmul.f32 %v906_v53, %v3537_v12  ;;  %v1334_v18 = vmul.f32 %v1270_v7, %v822_v55  ;;  %v1335_v60 = vmul.f32 %v1271_v37, %v823_v20  ;;  %v3555_v54 = vadd.f32 %v3361_v58, %v2212_v5 }
 0x1b4   : > { %2474 = vtanh.f32 %v1155_v2  ;;  %v1158_v35 = vmul.f32 0.7978846, %v1094_v6  ;;  %v1157_v33 = vmul.f32 0.7978846, %v1093_v40  ;;  %v904_v8 = vmul.f32 0.044715, %v3550_v21 }
 0x1b5   : > { %v2465_v19 = vpop.eup %2464  ;;  %2476 = vtanh.f32 %v1156_v23  ;;  %v1377_v39 = vpack.c.bf16 %v1335_v60, %v1334_v18  ;;  %v907_v52 = vmul.f32 0.044715, %v3555_v54  ;;  %v3560_v48 = vadd.f32 %v3361_v58, %v768_v43 }
 0x1b6   : > { %v2467_v41 = vpop.eup %2466  ;;  %v1159_v22 = vmul.f32 0.7978846, %v1095_v32  ;;  %2478 = vtanh.f32 %v1157_v33  ;;  %v968_v56 = vmul.f32 %v904_v8, %v3550_v21  ;;  %v1034_v2 = vmul.f32 %v970_v4, %v3537_v12 }
 0x1b7   : > { %v3563_v50 = vpop.eup %2468  ;;  %2262 = vmatmul.mubr.msk.bf16.gmra.mxu1 %vm1427_vm1, %v1377_v39  ;;  %v971_v14 = vmul.f32 %v907_v52, %v3555_v54  ;;  %v905_v29 = vmul.f32 0.044715, %v3560_v48  ;;  %v1272_v46 = vadd.f32 1.0, %v3482_v44  ;;  %v824_v36 = vmul.f32 0.5, %v3344_v47 }
 0x1b8   : > { %v1032_v58 = vmul.f32 %v968_v56, %v3550_v21  ;;  %v825_v6 = vmul.f32 0.5, %v3365_v38  ;;  %v1273_v31 = vadd.f32 1.0, %v3518_v13  ;;  %2480 = vtanh.f32 %v1158_v35 }
 0x1b9   : > { %v2471_v3 = vpop.eup %2470  ;;  %v1035_v5 = vmul.f32 %v971_v14, %v3555_v54  ;;  %v969_v30 = vmul.f32 %v905_v29, %v3560_v48  ;;  %v1336_v15 = vmul.f32 %v1272_v46, %v824_v36  ;;  %v1274_v44 = vadd.f32 1.0, %v3475_v51 }
 0x1ba   : > { %v1096_v9 = vadd.f32 %v1032_v58, %v3550_v21  ;;  %v1337_v63 = vmul.f32 %v1273_v31, %v825_v6  ;;  %v826_v47 = vmul.f32 0.5, %v3325_v0  ;;  %v827_v38 = vmul.f32 0.5, %v3349_v45 }
 0x1bb   : > { %v1033_v17 = vmul.f32 %v969_v30, %v3560_v48  ;;  %v1275_v13 = vadd.f32 1.0, %v3491_v49  ;;  %2482 = vtanh.f32 %v1159_v22  ;;  %v1098_v55 = vadd.f32 %v1034_v2, %v3537_v12 }
 0x1bc   : > { %v2473_v53 = vpop.eup %2472  ;;  %v1160_v28 = vmul.f32 0.7978846, %v1096_v9  ;;  %v1378_v20 = vpack.c.bf16 %v1337_v63, %v1336_v15  ;;  %v1338_v37 = vmul.f32 %v1274_v44, %v826_v47  ;;  %v1276_v51 = vadd.f32 1.0, %v3531_v62 }
 0x1bd   : > { %v1097_v7 = vadd.f32 %v1033_v17, %v3560_v48  ;;  %v1339_v23 = vmul.f32 %v1275_v13, %v827_v38  ;;  %v1099_v32 = vadd.f32 %v1035_v5, %v3555_v54  ;;  %v828_v0 = vmul.f32 0.5, %v3404_v25 }
 0x1be   : > { %2265 = vmatprep.mubr.msk.bf16.mxu1 %vm1427_vm1, %v1378_v20  ;;  %v829_v45 = vmul.f32 0.5, %v3416_v59  ;;  %v1277_v49 = vadd.f32 1.0, %v2467_v41  ;;  %2484 = vtanh.f32 %v1160_v28  ;;  %v831_v4 = vmul.f32 0.5, %v3410_v24 }
 0x1bf   : > { %v1161_v40 = vmul.f32 0.7978846, %v1097_v7  ;;  %v1379_v43 = vpack.c.bf16 %v1339_v23, %v1338_v37  ;;  %v1340_v18 = vmul.f32 %v1276_v51, %v828_v0  ;;  %v1278_v35 = vadd.f32 1.0, %v3521_v61 }
 0x1c0   : > { %v1341_v60 = vmul.f32 %v1277_v49, %v829_v45  ;;  %v1279_v33 = vadd.f32 1.0, %v2465_v19  ;;  %v833_v8 = vmul.f32 0.5, %v3471_v34  ;;  %v1280_v25 = vadd.f32 1.0, %v2471_v3 }
 0x1c1   : > { %v2475_v62 = vpop.eup %2474  ;;  %2486 = vtanh.f32 %v1161_v40  ;;  %2266 = vmatmul.mubr.msk.bf16.gmra.mxu1 %vm1427_vm1, %v1379_v43  ;;  %v1281_v39 = vadd.f32 1.0, %v2473_v53  ;;  %v832_v41 = vmul.f32 0.5, %v3456_v27  ;;  %v1163_v56 = vmul.f32 0.7978846, %v1099_v32 }
 0x1c2   : > { %v2477_v59 = vpop.eup %2476  ;;  %v1380_v52 = vpack.c.bf16 %v1341_v60, %v1340_v18  ;;  %v830_v24 = vmul.f32 0.5, %v3383_v26  ;;  %v1343_v2 = vmul.f32 %v1279_v33, %v831_v4  ;;  %v1162_v19 = vmul.f32 0.7978846, %v1098_v55  ;;  %v3617_v18 = vld [vmem:[%s3869_s4] ss:$0 sm:$0xff] }
 0x1c3   : > { %v2479_v22 = vpop.eup %2478  ;;  %v1345_v14 = vmul.f32 %v1281_v39, %v833_v8  ;;  %v1344_v61 = vmul.f32 %v1280_v25, %v832_v41  ;;  %2488 = vtanh.f32 %v1163_v56  ;;  %v1283_v6 = vadd.f32 1.0, %v2475_v62 }
 0x1c4   : > { %2269 = vmatprep.mubr.msk.bf16.mxu1 %vm1427_vm1, %v1380_v52  ;;  %v1342_v29 = vmul.f32 %v1278_v35, %v830_v24  ;;  %v1285_v34 = vadd.f32 1.0, %v2479_v22  ;;  %v837_v31 = vmul.f32 0.5, %v3516_v42  ;;  %v1284_v27 = vadd.f32 1.0, %v2477_v59 }
 0x1c5   : > { %v2481_v46 = vpop.eup %2480  ;;  %v1382_v58 = vpack.c.bf16 %v1345_v14, %v1344_v61  ;;  %2490 = vtanh.f32 %v1162_v19  ;;  %v835_v26 = vmul.f32 0.5, %v3461_v11  ;;  %v1282_v5 = vadd.f32 1.0, %v3563_v50 }
 0x1c6   : > { %v1381_v36 = vpack.c.bf16 %v1343_v2, %v1342_v29  ;;  %v836_v30 = vmul.f32 0.5, %v3507_v57  ;;  %v1349_v9 = vmul.f32 %v1285_v34, %v837_v31  ;;  %v834_v15 = vmul.f32 0.5, %v3440_v10 }
 0x1c7   : > { %v1347_v63 = vmul.f32 %v1283_v6, %v835_v26  ;;  %v841_v11 = vmul.f32 0.5, %v3560_v48  ;;  %v839_v50 = vmul.f32 0.5, %v3511_v1  ;;  %v1286_v57 = vadd.f32 1.0, %v2481_v46 }
 0x1c8   : > { %v2483_v3 = vpop.eup %2482  ;;  %v1348_v17 = vmul.f32 %v1284_v27, %v836_v30  ;;  %v1346_v42 = vmul.f32 %v1282_v5, %v834_v15  ;;  %v840_v10 = vmul.f32 0.5, %v3550_v21  ;;  %v838_v7 = vmul.f32 0.5, %v3489_v16 }
 0x1c9   : > { %2270 = vmatmul.mubr.msk.bf16.gmra.mxu1 %vm1427_vm1, %v1381_v36  ;;  %v1287_v53 = vadd.f32 1.0, %v2483_v3  ;;  %v843_v1 = vmul.f32 0.5, %v3555_v54  ;;  %v842_v21 = vmul.f32 0.5, %v3537_v12 }
 0x1ca   : > { %2273 = vmatprep.mubr.msk.bf16.mxu1 %vm1427_vm1, %v1382_v58  ;;  %v1384_v38 = vpack.c.bf16 %v1349_v9, %v1348_v17  ;;  %v1383_v13 = vpack.c.bf16 %v1347_v63, %v1346_v42  ;;  %v1350_v32 = vmul.f32 %v1286_v57, %v838_v7 }
 0x1cb   : > { %v2485_v44 = vpop.eup %2484  ;;  %v1351_v37 = vmul.f32 %v1287_v53, %v839_v50 }
 0x1cc   : > { %v1288_v28 = vadd.f32 1.0, %v2485_v44 }
 0x1cd   : > { %v1385_v48 = vpack.c.bf16 %v1351_v37, %v1350_v32 }
 0x1ce   : > { %v2487_v47 = vpop.eup %2486  ;;  %v1352_v51 = vmul.f32 %v1288_v28, %v840_v10 }
 0x1cf   : > { %v1289_v55 = vadd.f32 1.0, %v2487_v47 }
 0x1d0   : > { %v2489_v23 = vpop.eup %2488 }
 0x1d1   : > { %2274 = vmatmul.mubr.msk.bf16.gmra.mxu1 %vm1427_vm1, %v1383_v13  ;;  %v1353_v20 = vmul.f32 %v1289_v55, %v841_v11  ;;  %v1291_v49 = vadd.f32 1.0, %v2489_v23 }
 0x1d2   : > { %2277 = vmatprep.mubr.msk.bf16.mxu1 %vm1427_vm1, %v1384_v38  ;;  %v2491_v0 = vpop.eup %2490 }
 0x1d3   : > { %v1386_v45 = vpack.c.bf16 %v1353_v20, %v1352_v51  ;;  %v1290_v40 = vadd.f32 1.0, %v2491_v0  ;;  %v1355_v43 = vmul.f32 %v1291_v49, %v843_v1 }
 0x1d5   : > { %v1354_v16 = vmul.f32 %v1290_v40, %v842_v21 }
 0x1d7   : > { %v1387_v4 = vpack.c.bf16 %v1355_v43, %v1354_v16 }
 0x1d9   : > { %2278 = vmatmul.mubr.msk.bf16.gmra.mxu1 %vm1427_vm1, %v1385_v48 }
 0x1da   : > { %2281 = vmatprep.mubr.msk.bf16.mxu1 %vm1427_vm1, %v1386_v45 }
 0x1e1   : > { %2282 = vmatmul.mubr.msk.bf16.gmra.mxu1 %vm1427_vm1, %v1387_v4 }
 0x20e   : > { %v2223_v60 = vpop.f32.mrf.mxu1 }
 0x20f   : > { %v1567_v35 = vadd.f32 %v2223_v60, %v3617_v18 }
 0x210   : > { %v1558_v33 = vpop.f32.mrf.mxu1 }
 0x211   : > { %1815 = vst.msk [vmem:[%s3622_s28 + $0x10] sm:$0xff] %vm394_vm0, %v1567_v35  ;;  %v1559_v12 = vadd.f32 %v3617_v18, %v1558_v33 }
 0x212   : > { %v2224_v54 = vpop.f32.mrf.mxu1 }
 0x213   : > { %1813 = vst.msk [vmem:[%s3622_s28] sm:$0xff] %vm394_vm0, %v1559_v12  ;;  %v1570_v62 = vadd.f32 %v2224_v54, %v3617_v18 }
 0x214   : > { %v1561_v8 = vpop.f32.mrf.mxu1 }
 0x215   : > { %1816 = vst.msk [vmem:[%s3622_s28 + $0x18] sm:$0xff] %vm394_vm0, %v1570_v62  ;;  %v1562_v25 = vadd.f32 %v3617_v18, %v1561_v8 }
 0x217   : > { %1814 = vst.msk [vmem:[%s3622_s28 + $0x8] sm:$0xff] %vm394_vm0, %v1562_v25 }
 0x21b   : > { %v2227_v39 = vpop.f32.mrf.mxu1 }
 0x21c   : > { %v1583_v59 = vadd.f32 %v2227_v39, %v3617_v18 }
 0x21d   : > { %v1574_v52 = vpop.f32.mrf.mxu1 }
 0x21e   : > { %1819 = vst.msk [vmem:[%s3622_s28 + $0x30] sm:$0xff] %vm394_vm0, %v1583_v59  ;;  %v1575_v41 = vadd.f32 %v3617_v18, %v1574_v52 }
 0x21f   : > { %v2228_v22 = vpop.f32.mrf.mxu1 }
 0x220   : > { %1817 = vst.msk [vmem:[%s3622_s28 + $0x20] sm:$0xff] %vm394_vm0, %v1575_v41  ;;  %v1586_v56 = vadd.f32 %v2228_v22, %v3617_v18 }
 0x221   : > { %v1577_v24 = vpop.f32.mrf.mxu1 }
 0x222   : > { %1820 = vst.msk [vmem:[%s3622_s28 + $0x38] sm:$0xff] %vm394_vm0, %v1586_v56  ;;  %v1578_v2 = vadd.f32 %v3617_v18, %v1577_v24 }
 0x223   : > { %v2231_v14 = vpop.f32.mrf.mxu1 }
 0x224   : > { %1818 = vst.msk [vmem:[%s3622_s28 + $0x28] sm:$0xff] %vm394_vm0, %v1578_v2  ;;  %v1599_v61 = vadd.f32 %v2231_v14, %v3617_v18 }
 0x225   : > { %v1590_v19 = vpop.f32.mrf.mxu1 }
 0x226   : > { %1823 = vst.msk [vmem:[%s3622_s28 + $0x50] sm:$0xff] %vm394_vm0, %v1599_v61  ;;  %v1591_v29 = vadd.f32 %v3617_v18, %v1590_v19 }
 0x227   : > { %v2232_v46 = vpop.f32.mrf.mxu1 }
 0x228   : > { %1821 = vst.msk [vmem:[%s3622_s28 + $0x40] sm:$0xff] %vm394_vm0, %v1591_v29  ;;  %v1602_v58 = vadd.f32 %v2232_v46, %v3617_v18 }
 0x229   : > { %v1593_v34 = vpop.f32.mrf.mxu1 }
 0x22a   : > { %1824 = vst.msk [vmem:[%s3622_s28 + $0x58] sm:$0xff] %vm394_vm0, %v1602_v58  ;;  %v1594_v36 = vadd.f32 %v3617_v18, %v1593_v34 }
 0x22c   : > { %1822 = vst.msk [vmem:[%s3622_s28 + $0x48] sm:$0xff] %vm394_vm0, %v1594_v36 }
 0x22f   : > { %v2235_v6 = vpop.f32.mrf.mxu1 }
 0x230   : > { %v1615_v31 = vadd.f32 %v2235_v6, %v3617_v18 }
 0x231   : > { %v1606_v27 = vpop.f32.mrf.mxu1 }
 0x232   : > { %1827 = vst.msk [vmem:[%s3622_s28 + $0x70] sm:$0xff] %vm394_vm0, %v1615_v31  ;;  %v1607_v3 = vadd.f32 %v3617_v18, %v1606_v27 }
 0x233   : > { %v2236_v26 = vpop.f32.mrf.mxu1 }
 0x234   : > { %1825 = vst.msk [vmem:[%s3622_s28 + $0x60] sm:$0xff] %vm394_vm0, %v1607_v3  ;;  %v1618_v5 = vadd.f32 %v2236_v26, %v3617_v18 }
 0x235   : > { %v1609_v30 = vpop.f32.mrf.mxu1 }
 0x236   : > { %1828 = vst.msk [vmem:[%s3622_s28 + $0x78] sm:$0xff] %vm394_vm0, %v1618_v5  ;;  %v1610_v9 = vadd.f32 %v3617_v18, %v1609_v30 }
 0x238   : > { %1826 = vst.msk [vmem:[%s3622_s28 + $0x68] sm:$0xff] %vm394_vm0, %v1610_v9 }
 0x239   : > { %v2239_v15 = vpop.f32.mrf.mxu1 }
 0x23a   : > { %v1631_v63 = vadd.f32 %v2239_v15, %v3617_v18 }
 0x23b   : > { %v1622_v44 = vpop.f32.mrf.mxu1 }
 0x23c   : > { %1831 = vst.msk [vmem:[%s3622_s28 + $0x90] sm:$0xff] %vm394_vm0, %v1631_v63  ;;  %v1623_v17 = vadd.f32 %v3617_v18, %v1622_v44 }
 0x23d   : > { %v2240_v42 = vpop.f32.mrf.mxu1 }
 0x23e   : > { %1829 = vst.msk [vmem:[%s3622_s28 + $0x80] sm:$0xff] %vm394_vm0, %v1623_v17  ;;  %v1634_v47 = vadd.f32 %v2240_v42, %v3617_v18 }
 0x23f   : > { %v1625_v38 = vpop.f32.mrf.mxu1 }
 0x240   : > { %1832 = vst.msk [vmem:[%s3622_s28 + $0x98] sm:$0xff] %vm394_vm0, %v1634_v47  ;;  %v1626_v13 = vadd.f32 %v3617_v18, %v1625_v38 }
 0x242   : > { %1830 = vst.msk [vmem:[%s3622_s28 + $0x88] sm:$0xff] %vm394_vm0, %v1626_v13 }
 0x244   : > { %v2243_v53 = vpop.f32.mrf.mxu1 }
 0x245   : > { %v1647_v55 = vadd.f32 %v2243_v53, %v3617_v18 }
 0x246   : > { %v1638_v11 = vpop.f32.mrf.mxu1 }
 0x247   : > { %1835 = vst.msk [vmem:[%s3622_s28 + $0xb0] sm:$0xff] %vm394_vm0, %v1647_v55  ;;  %v1639_v28 = vadd.f32 %v3617_v18, %v1638_v11 }
 0x248   : > { %v2244_v50 = vpop.f32.mrf.mxu1 }
 0x249   : > { %1833 = vst.msk [vmem:[%s3622_s28 + $0xa0] sm:$0xff] %vm394_vm0, %v1639_v28  ;;  %v1650_v57 = vadd.f32 %v2244_v50, %v3617_v18 }
 0x24a   : > { %v1641_v10 = vpop.f32.mrf.mxu1 }
 0x24b   : > { %1836 = vst.msk [vmem:[%s3622_s28 + $0xb8] sm:$0xff] %vm394_vm0, %v1650_v57  ;;  %v1642_v20 = vadd.f32 %v3617_v18, %v1641_v10 }
 0x24d   : > { %1834 = vst.msk [vmem:[%s3622_s28 + $0xa8] sm:$0xff] %vm394_vm0, %v1642_v20 }
 0x24e   : > { %v2247_v7 = vpop.f32.mrf.mxu1 }
 0x24f   : > { %v1663_v37 = vadd.f32 %v2247_v7, %v3617_v18 }
 0x250   : > { %v1654_v23 = vpop.f32.mrf.mxu1 }
 0x251   : > { %1839 = vst.msk [vmem:[%s3622_s28 + $0xd0] sm:$0xff] %vm394_vm0, %v1663_v37  ;;  %v1655_v51 = vadd.f32 %v3617_v18, %v1654_v23 }
 0x252   : > { %v2248_v32 = vpop.f32.mrf.mxu1 }
 0x253   : > { %1837 = vst.msk [vmem:[%s3622_s28 + $0xc0] sm:$0xff] %vm394_vm0, %v1655_v51  ;;  %v1666_v0 = vadd.f32 %v2248_v32, %v3617_v18 }
 0x254   : > { %v1657_v45 = vpop.f32.mrf.mxu1 }
 0x255   : > { %1840 = vst.msk [vmem:[%s3622_s28 + $0xd8] sm:$0xff] %vm394_vm0, %v1666_v0  ;;  %v1658_v48 = vadd.f32 %v3617_v18, %v1657_v45 }
 0x257   : > { %1838 = vst.msk [vmem:[%s3622_s28 + $0xc8] sm:$0xff] %vm394_vm0, %v1658_v48 }
 0x258   : > { %v2251_v49 = vpop.f32.mrf.mxu1 }
 0x259   : > { %v1679_v1 = vadd.f32 %v2251_v49, %v3617_v18 }
 0x25a   : > { %v1670_v40 = vpop.f32.mrf.mxu1 }
 0x25b   : > { %1843 = vst.msk [vmem:[%s3622_s28 + $0xf0] sm:$0xff] %vm394_vm0, %v1679_v1  ;;  %v1671_v21 = vadd.f32 %v3617_v18, %v1670_v40 }
 0x25c   : > { %v2252_v43 = vpop.f32.mrf.mxu1 }
 0x25d   : > { %1841 = vst.msk [vmem:[%s3622_s28 + $0xe0] sm:$0xff] %vm394_vm0, %v1671_v21  ;;  %v1682_v16 = vadd.f32 %v2252_v43, %v3617_v18 }
 0x25e   : > { %v1673_v4 = vpop.f32.mrf.mxu1 }
 0x25f   : > { %1844 = vst.msk [vmem:[%s3622_s28 + $0xf8] sm:$0xff] %vm394_vm0, %v1682_v16  ;;  %v1674_v60 = vadd.f32 %v3617_v18, %v1673_v4 }
 0x261   : > { %1842 = vst.msk [vmem:[%s3622_s28 + $0xe8] sm:$0xff] %vm394_vm0, %v1674_v60 }
 0x262   : > { %v2255_v35 = vpop.f32.mrf.mxu1 }
 0x263   : > { %v1695_v33 = vadd.f32 %v2255_v35, %v3617_v18 }
 0x264   : > { %v1686_v12 = vpop.f32.mrf.mxu1 }
 0x265   : > { %1847 = vst.msk [vmem:[%s3622_s28 + $0x110] sm:$0xff] %vm394_vm0, %v1695_v33  ;;  %v1687_v54 = vadd.f32 %v3617_v18, %v1686_v12 }
 0x266   : > { %v2256_v62 = vpop.f32.mrf.mxu1 }
 0x267   : > { %1845 = vst.msk [vmem:[%s3622_s28 + $0x100] sm:$0xff] %vm394_vm0, %v1687_v54  ;;  %v1698_v8 = vadd.f32 %v2256_v62, %v3617_v18 }
 0x268   : > { %v1689_v25 = vpop.f32.mrf.mxu1 }
 0x269   : > { %1848 = vst.msk [vmem:[%s3622_s28 + $0x118] sm:$0xff] %vm394_vm0, %v1698_v8  ;;  %v1690_v39 = vadd.f32 %v3617_v18, %v1689_v25 }
 0x26b   : > { %1846 = vst.msk [vmem:[%s3622_s28 + $0x108] sm:$0xff] %vm394_vm0, %v1690_v39 }
 0x26d   : > { %v2259_v59 = vpop.f32.mrf.mxu1 }
 0x26e   : > { %v1711_v52 = vadd.f32 %v2259_v59, %v3617_v18 }
 0x26f   : > { %v1702_v41 = vpop.f32.mrf.mxu1 }
 0x270   : > { %1851 = vst.msk [vmem:[%s3622_s28 + $0x130] sm:$0xff] %vm394_vm0, %v1711_v52  ;;  %v1703_v22 = vadd.f32 %v3617_v18, %v1702_v41 }
 0x271   : > { %v2260_v56 = vpop.f32.mrf.mxu1 }
 0x272   : > { %1849 = vst.msk [vmem:[%s3622_s28 + $0x120] sm:$0xff] %vm394_vm0, %v1703_v22  ;;  %v1714_v24 = vadd.f32 %v2260_v56, %v3617_v18 }
 0x273   : > { %v1705_v2 = vpop.f32.mrf.mxu1 }
 0x274   : > { %1852 = vst.msk [vmem:[%s3622_s28 + $0x138] sm:$0xff] %vm394_vm0, %v1714_v24  ;;  %v1706_v14 = vadd.f32 %v3617_v18, %v1705_v2 }
 0x276   : > { %1850 = vst.msk [vmem:[%s3622_s28 + $0x128] sm:$0xff] %vm394_vm0, %v1706_v14 }
 0x277   : > { %v2263_v61 = vpop.f32.mrf.mxu1 }
 0x278   : > { %v1727_v19 = vadd.f32 %v2263_v61, %v3617_v18 }
 0x279   : > { %v1718_v29 = vpop.f32.mrf.mxu1 }
 0x27a   : > { %1855 = vst.msk [vmem:[%s3622_s28 + $0x150] sm:$0xff] %vm394_vm0, %v1727_v19  ;;  %v1719_v46 = vadd.f32 %v3617_v18, %v1718_v29 }
 0x27b   : > { %v2264_v58 = vpop.f32.mrf.mxu1 }
 0x27c   : > { %1853 = vst.msk [vmem:[%s3622_s28 + $0x140] sm:$0xff] %vm394_vm0, %v1719_v46  ;;  %v1730_v34 = vadd.f32 %v2264_v58, %v3617_v18 }
 0x27d   : > { %v1721_v36 = vpop.f32.mrf.mxu1 }
 0x27e   : > { %1856 = vst.msk [vmem:[%s3622_s28 + $0x158] sm:$0xff] %vm394_vm0, %v1730_v34  ;;  %v1722_v6 = vadd.f32 %v3617_v18, %v1721_v36 }
 0x280   : > { %1854 = vst.msk [vmem:[%s3622_s28 + $0x148] sm:$0xff] %vm394_vm0, %v1722_v6 }
 0x281   : > { %v2267_v31 = vpop.f32.mrf.mxu1 }
 0x282   : > { %v1743_v27 = vadd.f32 %v2267_v31, %v3617_v18 }
 0x283   : > { %v1734_v3 = vpop.f32.mrf.mxu1 }
 0x284   : > { %1859 = vst.msk [vmem:[%s3622_s28 + $0x170] sm:$0xff] %vm394_vm0, %v1743_v27  ;;  %v1735_v26 = vadd.f32 %v3617_v18, %v1734_v3 }
 0x285   : > { %v2268_v5 = vpop.f32.mrf.mxu1 }
 0x286   : > { %1857 = vst.msk [vmem:[%s3622_s28 + $0x160] sm:$0xff] %vm394_vm0, %v1735_v26  ;;  %v1746_v30 = vadd.f32 %v2268_v5, %v3617_v18 }
 0x287   : > { %v1737_v9 = vpop.f32.mrf.mxu1 }
 0x288   : > { %1860 = vst.msk [vmem:[%s3622_s28 + $0x178] sm:$0xff] %vm394_vm0, %v1746_v30  ;;  %v1738_v15 = vadd.f32 %v3617_v18, %v1737_v9 }
 0x289   : > { %v2271_v63 = vpop.f32.mrf.mxu1 }
 0x28a   : > { %1858 = vst.msk [vmem:[%s3622_s28 + $0x168] sm:$0xff] %vm394_vm0, %v1738_v15  ;;  %v1759_v44 = vadd.f32 %v2271_v63, %v3617_v18 }
 0x28b   : > { %v1750_v17 = vpop.f32.mrf.mxu1 }
 0x28c   : > { %1863 = vst.msk [vmem:[%s3622_s28 + $0x190] sm:$0xff] %vm394_vm0, %v1759_v44  ;;  %v1751_v42 = vadd.f32 %v3617_v18, %v1750_v17 }
 0x28d   : > { %v2272_v47 = vpop.f32.mrf.mxu1 }
 0x28e   : > { %1861 = vst.msk [vmem:[%s3622_s28 + $0x180] sm:$0xff] %vm394_vm0, %v1751_v42  ;;  %v1762_v38 = vadd.f32 %v2272_v47, %v3617_v18 }
 0x28f   : > { %v1753_v13 = vpop.f32.mrf.mxu1 }
 0x290   : > { %1864 = vst.msk [vmem:[%s3622_s28 + $0x198] sm:$0xff] %vm394_vm0, %v1762_v38  ;;  %v1754_v53 = vadd.f32 %v3617_v18, %v1753_v13 }
 0x291   : > { %v2275_v55 = vpop.f32.mrf.mxu1 }
 0x292   : > { %1862 = vst.msk [vmem:[%s3622_s28 + $0x188] sm:$0xff] %vm394_vm0, %v1754_v53  ;;  %v1775_v11 = vadd.f32 %v2275_v55, %v3617_v18 }
 0x293   : > { %v1766_v28 = vpop.f32.mrf.mxu1 }
 0x294   : > { %1867 = vst.msk [vmem:[%s3622_s28 + $0x1b0] sm:$0xff] %vm394_vm0, %v1775_v11  ;;  %v1767_v50 = vadd.f32 %v3617_v18, %v1766_v28 }
 0x295   : > { %v2276_v57 = vpop.f32.mrf.mxu1 }
 0x296   : > { %1865 = vst.msk [vmem:[%s3622_s28 + $0x1a0] sm:$0xff] %vm394_vm0, %v1767_v50  ;;  %v1778_v10 = vadd.f32 %v2276_v57, %v3617_v18 }
 0x297   : > { %v1769_v20 = vpop.f32.mrf.mxu1 }
 0x298   : > { %1868 = vst.msk [vmem:[%s3622_s28 + $0x1b8] sm:$0xff] %vm394_vm0, %v1778_v10  ;;  %v1770_v7 = vadd.f32 %v3617_v18, %v1769_v20 }
 0x299   : > { %v2279_v37 = vpop.f32.mrf.mxu1 }
 0x29a   : > { %1866 = vst.msk [vmem:[%s3622_s28 + $0x1a8] sm:$0xff] %vm394_vm0, %v1770_v7  ;;  %v1791_v23 = vadd.f32 %v2279_v37, %v3617_v18 }
 0x29b   : > { %v1782_v51 = vpop.f32.mrf.mxu1 }
 0x29c   : > { %1871 = vst.msk [vmem:[%s3622_s28 + $0x1d0] sm:$0xff] %vm394_vm0, %v1791_v23  ;;  %v1783_v32 = vadd.f32 %v3617_v18, %v1782_v51 }
 0x29d   : > { %v2280_v0 = vpop.f32.mrf.mxu1 }
 0x29e   : > { %1869 = vst.msk [vmem:[%s3622_s28 + $0x1c0] sm:$0xff] %vm394_vm0, %v1783_v32  ;;  %v1794_v45 = vadd.f32 %v2280_v0, %v3617_v18 }
 0x29f   : > { %v1785_v48 = vpop.f32.mrf.mxu1 }
 0x2a0   : > { %1872 = vst.msk [vmem:[%s3622_s28 + $0x1d8] sm:$0xff] %vm394_vm0, %v1794_v45  ;;  %v1786_v49 = vadd.f32 %v3617_v18, %v1785_v48 }
 0x2a1   : > { %v2283_v1 = vpop.f32.mrf.mxu1 }
 0x2a2   : > { %1870 = vst.msk [vmem:[%s3622_s28 + $0x1c8] sm:$0xff] %vm394_vm0, %v1786_v49  ;;  %v1807_v40 = vadd.f32 %v2283_v1, %v3617_v18 }
 0x2a3   : > { %v1798_v21 = vpop.f32.mrf.mxu1 }
 0x2a4   : > { %1875 = vst.msk [vmem:[%s3622_s28 + $0x1f0] sm:$0xff] %vm394_vm0, %v1807_v40  ;;  %v1799_v43 = vadd.f32 %v3617_v18, %v1798_v21 }
 0x2a5   : > { %v2284_v16 = vpop.f32.mrf.mxu1 }
 0x2a6   : > { %1873 = vst.msk [vmem:[%s3622_s28 + $0x1e0] sm:$0xff] %vm394_vm0, %v1799_v43  ;;  %v1810_v4 = vadd.f32 %v2284_v16, %v3617_v18 }
 0x2a7   : > { %v1801_v60 = vpop.f32.mrf.mxu1 }
 0x2a8   : > { %1876 = vst.msk [vmem:[%s3622_s28 + $0x1f8] sm:$0xff] %vm394_vm0, %v1810_v4  ;;  %v1802_v35 = vadd.f32 %v3617_v18, %v1801_v60 }
 0x2aa   : > { %1874 = vst.msk [vmem:[%s3622_s28 + $0x1e8] sm:$0xff] %vm394_vm0, %v1802_v35 }
 0x2ab   : > { %2586 = shalt.err (!%p2583_p9)
}
 0x2ac   : > { %s2587_s26 = scalar_lea.hbm %s3815_s14, 8192  ;;  %s2591_s11 = scalar_lea.hbm %s3870_s5, 16384 }
 0x2ad   : > { %p2588_p13 = scmp.ne.s32.totalorder %s3815_s14, %s2587_s26  ;;  %p2592_p4 = scmp.lt.s32.totalorder %s3815_s14, %s3870_s5 }
 0x2ae   : > { %p2593_p8 = scmp.lt.s32.totalorder %s2591_s11, %s2587_s26 }
 0x2af   : > { %p2589_p5 = pnand %p2588_p13, %p3886_p10 }
 0x2b0   : > { %p2594_p3 = por %p2593_p8, %p2592_p4 }
 0x2b1   : > { %p2590_p0 = pneg %p2589_p5 }
 0x2b3   : > { %p2595_p11 = pnand %p2594_p3, %p2590_p0 }
 0x2b5   : > { %2598 = shalt.err (!%p2595_p11)
}
 0x2b6   : > { %s2651_s6 = smov 128   ;;  %s2652_s9 = smov 8  }
 0x2b7   : > { %2295 = dma.vmem_to_hbm [thread:$0]  (%p3886_p10), %s3817_s7, 8192, %s3815_s14, %s1878_s22, %s2651_s6, %s2651_s6, %s2652_s9  }
 0x2b8 PF: > { %s1906_s13 = sand.u32 1, %s2629_s18   ;;  %p3887_p1 = scmp.ne.s32.totalorder %s3876_s25, 0 }
 0x2b9   : > { %p3888_p2 = scmp.ge.s32.totalorder %s2641_s21, 2  ;;  %s1907_s17 = scalar_lea.sflag [#allocation4], %s1906_s13 }
 0x2bb   : > { %p2309_p6 = pnand %p3888_p2, %p3887_p1 }
 0x2bd   : > { %p2310_p12 = pneg %p2309_p6 }
 0x2bf   : > { %2624 = dma.done.wait (%p2310_p12), %s1907_s17, 8192  }
 0x2c0   : > { %2626 = vsyncadd (%p2310_p12), %s1907_s17, 4294959104  ;;  %p19_p7 = scmp.ge.s32.totalorder %s2755_s15, 4   ;;  %s3889_s18 = smov %s2633_s19 }
 0x2c1   : > { %s3890_s19 = smov %s2637_s20  ;;  %s3891_s20 = smov %s2771_s27 }
 0x2c2   : > { %s3892_s21 = smov %s2755_s15  ;;  %21 = sbr.rel (!%p19_p7) target bundleno = 6 (0x6), region = 93 }
 0x2c7   :  { %1912 = vsyncpa [#allocation3], 1 }
 0x2c8   :  { %1914 = vsyncpa [#allocation3 + $0x1], 1 }
 0x2c9   :  { %1915 = vsyncpa [#allocation6], 1 }
 0x2ca   :  { %1916 = vsyncpa [#allocation4], 1 }
 0x2cb   :  { %1918 = vsyncpa [#allocation4 + $0x1], 1 }

</bundles_post_ra>
